<compile_context>
chip_gen: v7x
topology: tpu7x:2x2x1
jax: 0.10.0
libtpu: 0.0.40
codegen_flags: <defaults>
</compile_context>

<pallas_src>
import jax
import jax.numpy as jnp
from jax import lax
from jax.experimental import pallas as pl
from jax.experimental.pallas import tpu as pltpu

# ---------------- model hyper-params (PyTorch defaults) ----------------
INPUT_SIZE = 512          # visual feature size (== 512 -> no feature_extractor)
AUDIO_INPUT_SIZE = 64     # audio feature size (unused in NetVLAD branch)
NUM_CLASSES = 17
VOCAB_SIZE = 64           # NetVLAD cluster count K
BN_EPS = 1e-5
NORM_EPS = 1e-12          # F.normalize default eps

# TODO(synk): feature_extractor / audio_feature_extractor Linear branches are
# only active when input sizes differ from 512/64; defaults skip them.


def _choose_fr_chunk(fr, max_chunk=1024):
    """Largest FR chunk <= max_chunk that is a multiple of 8 and divides FR."""
    if fr <= max_chunk:
        return fr
    for c in range(max_chunk, 7, -8):
        if fr % c == 0:
            return c
    return fr  # fallback: single chunk (may need a raised vmem limit for huge FR)


# ---------------- kernel 1: NetVLAD pooling, FR-chunked, lane-dense (K, D) ----------------
def netvlad_kernel(x_ref, clusters_ref, clusters2t_ref, bn_ref, vlad_ref,
                   vlad_acc, asum_acc):
    # x_ref:          (1, FRC, D)   current frame chunk of one sample
    # clusters_ref:   (D, K)        resident
    # clusters2t_ref: (K, D)        resident (pre-transposed clusters2)
    # bn_ref:         (2, K)        rows = [scale, shift] (pre-fused eval BN)
    # vlad_ref:       (1, K, D)     output (written on last chunk only)
    # vlad_acc:       (K, D) f32    VMEM accumulator
    # asum_acc:       (K, 1) f32    VMEM accumulator
    f = pl.program_id(1)
    nf = pl.num_programs(1)

    @pl.when(f == 0)
    def _init():
        vlad_acc[...] = jnp.zeros_like(vlad_acc)
        asum_acc[...] = jnp.zeros_like(asum_acc)

    x = x_ref[0].astype(jnp.float32)                                # (FRC, D)

    # soft assignment: (FRC, D) @ (D, K) -> (FRC, K)
    a = jnp.dot(x, clusters_ref[...], preferred_element_type=jnp.float32)

    # fused eval-mode BatchNorm1d: a * scale + shift
    a = a * bn_ref[0:1, :] + bn_ref[1:2, :]

    # softmax over K (per-frame -> exact under FR chunking); approx recip -> EUP
    a = a - jnp.max(a, axis=1, keepdims=True)
    a = jnp.exp(a)
    a = a * pl.reciprocal(jnp.sum(a, axis=1, keepdims=True), approx=True)

    # accumulate vlad[k,d] += sum_f a[f,k] x[f,d]   and   a_sum[k] += sum_f a[f,k]
    vlad_acc[...] += lax.dot_general(a, x, (((0,), (0,)), ((), ())),
                                     preferred_element_type=jnp.float32)   # (K, D)
    ones_fr = jnp.ones((a.shape[0], 1), jnp.float32)
    asum_acc[...] += lax.dot_general(a, ones_fr, (((0,), (0,)), ((), ())),
                                     preferred_element_type=jnp.float32)   # (K, 1)

    @pl.when(f == nf - 1)
    def _finalize():
        vlad = vlad_acc[...] - asum_acc[...] * clusters2t_ref[...]          # (K, D)

        # intra-normalization over D (== F.normalize(dim=1) on (B, D, K))
        row_sumsq = jnp.sum(vlad * vlad, axis=1, keepdims=True)             # (K, 1)
        inv_row = lax.rsqrt(jnp.maximum(row_sumsq, NORM_EPS * NORM_EPS))    # (K, 1)

        # global L2 norm derived from the per-row sums (no second full reduce)
        tot_sumsq = jnp.sum(row_sumsq * (inv_row * inv_row))
        inv_tot = lax.rsqrt(jnp.maximum(tot_sumsq, NORM_EPS * NORM_EPS))

        vlad_ref[0] = vlad * (inv_row * inv_tot)                            # one multiply pass


def netvlad_pool(x, clusters, clusters2_t, bn_fused, *, max_fr_chunk=1024):
    BS, FR, D = x.shape
    K = clusters.shape[1]
    frc = _choose_fr_chunk(FR, max_fr_chunk)
    nfc = FR // frc
    return pl.pallas_call(
        netvlad_kernel,
        out_shape=jax.ShapeDtypeStruct((BS, K, D), jnp.float32),
        grid_spec=pltpu.PrefetchScalarGridSpec(
            num_scalar_prefetch=0,
            grid=(BS, nfc),
            in_specs=[
                pl.BlockSpec((1, frc, D), lambda b, f: (b, f, 0)),
                pl.BlockSpec((D, K), lambda b, f: (0, 0)),     # resident
                pl.BlockSpec((K, D), lambda b, f: (0, 0)),     # resident
                pl.BlockSpec((2, K), lambda b, f: (0, 0)),     # resident
            ],
            out_specs=pl.BlockSpec((1, K, D), lambda b, f: (b, 0, 0)),
            scratch_shapes=[
                pltpu.VMEM((K, D), jnp.float32),
                pltpu.VMEM((K, 1), jnp.float32),
            ],
        ),
        compiler_params=pltpu.CompilerParams(
            dimension_semantics=("parallel", "arbitrary")),
    )(x, clusters, clusters2_t, bn_fused)


# ---------------- kernel 2: fc + sigmoid head (k-grid, lane-dense (C, tk) weight) ----------------
def fc_sigmoid_kernel(x_ref, w_ref, b_ref, o_ref):
    # x_ref: (BS, TK), w_ref: (C, TK), b_ref: (1, C), o_ref: (BS, C) resident acc
    @pl.when(pl.program_id(0) == 0)
    def _init():
        o_ref[...] = jnp.zeros_like(o_ref)

    # (BS, TK) contracted with (C, TK) on TK  ->  (BS, C)   (A @ B^T on MXU)
    o_ref[...] += lax.dot_general(x_ref[...], w_ref[...],
                                  (((1,), (1,)), ((), ())),
                                  preferred_element_type=jnp.float32)

    @pl.when(pl.program_id(0) == pl.num_programs(0) - 1)
    def _finalize():
        o_ref[...] = jax.nn.sigmoid(o_ref[...] + b_ref[...])


def fc_sigmoid(x_flat, w_c_kd, b, *, tk=4096):
    BS, KD = x_flat.shape
    C = w_c_kd.shape[0]
    if KD % tk != 0:
        tk = KD                      # fallback: single contraction step
    nk = KD // tk
    return pl.pallas_call(
        fc_sigmoid_kernel,
        out_shape=jax.ShapeDtypeStruct((BS, C), jnp.float32),
        grid_spec=pltpu.PrefetchScalarGridSpec(
            num_scalar_prefetch=0,
            grid=(nk,),
            in_specs=[
                pl.BlockSpec((BS, tk), lambda k: (0, k)),
                pl.BlockSpec((C, tk), lambda k: (0, k)),   # 16 KB contiguous HBM rows
                pl.BlockSpec((1, C), lambda k: (0, 0)),
            ],
            out_specs=pl.BlockSpec((BS, C), lambda k: (0, 0)),   # resident accumulator
        ),
        compiler_params=pltpu.CompilerParams(
            dimension_semantics=("arbitrary",)),
    )(x_flat, w_c_kd, b)


# ---------------- full model forward ----------------
def model_forward(visual_inputs, audio_inputs, params):
    # pool == 'NetVLAD': audio_inputs unused (matches PyTorch forward branch).
    del audio_inputs
    pooled = netvlad_pool(visual_inputs,
                          params["clusters"],
                          params["clusters2_t"],
                          params["bn_fused"])               # (BS, K, D), lane-dense
    BS, K, D = pooled.shape
    vlad_flat = pooled.reshape(BS, K * D)                   # k-major / d-minor (free reshape)
    # Dropout(p=0.4) is identity at inference time.
    return fc_sigmoid(vlad_flat, params["fc_w_c_kd"], params["fc_b"])


# ---------------- parameters ----------------
def init_params(key, D=INPUT_SIZE, K=VOCAB_SIZE, C=NUM_CLASSES + 1):
    """Parameters in the same shapes/orientations as the PyTorch module."""
    k1, k2, k3, k4, k5, k6 = jax.random.split(key, 6)
    scale = 1.0 / jnp.sqrt(jnp.float32(D))
    clusters = scale * jax.random.normal(k1, (D, K), jnp.float32)        # NetVLAD.clusters
    clusters2 = scale * jax.random.normal(k2, (1, D, K), jnp.float32)    # NetVLAD.clusters2
    gamma = 1.0 + 0.1 * jax.random.normal(k3, (K,), jnp.float32)
    beta = 0.1 * jax.random.normal(k4, (K,), jnp.float32)
    running_mean = jnp.zeros((K,), jnp.float32)
    running_var = jnp.ones((K,), jnp.float32)
    fc_bound = 1.0 / jnp.sqrt(jnp.float32(D * K))
    # torch fc.weight is (C, D*K) with flat input index d*K + k (d-major)
    fc_w = jax.random.uniform(k5, (C, D * K), jnp.float32, -fc_bound, fc_bound)
    fc_b = jax.random.uniform(k6, (C,), jnp.float32, -fc_bound, fc_bound)
    return dict(clusters=clusters, clusters2=clusters2, gamma=gamma, beta=beta,
                running_mean=running_mean, running_var=running_var,
                fc_w=fc_w, fc_b=fc_b)


def prepare_params(p, D=INPUT_SIZE, K=VOCAB_SIZE):
    """Re-lay torch-shaped params into the lane-dense kernel layouts."""
    C = p["fc_w"].shape[0]
    bn_scale = p["gamma"] * lax.rsqrt(p["running_var"] + BN_EPS)
    bn_shift = p["beta"] - p["running_mean"] * bn_scale
    bn_fused = jnp.stack([bn_scale, bn_shift], axis=0)                   # (2, K)
    clusters2_t = p["clusters2"].reshape(D, K).T                         # (K, D)
    # torch flatten of (B, D, K) is d-major/k-minor; kernel flatten of (B, K, D)
    # is k-major/d-minor -> permute fc weight consistently, keep it as (C, K*D)
    # so the fc kernel streams 16 KB contiguous rows.
    fc_w_c_kd = p["fc_w"].reshape(C, D, K).transpose(0, 2, 1).reshape(C, K * D)
    fc_b = p["fc_b"].reshape(1, C)
    # TODO(synk): optional bf16 storage of fc_w / inputs (review item) left out
    # to keep f32 parity with the PyTorch reference.
    return dict(clusters=p["clusters"], clusters2_t=clusters2_t, bn_fused=bn_fused,
                fc_w_c_kd=fc_w_c_kd, fc_b=fc_b)


if __name__ == "__main__":
    key = jax.random.PRNGKey(0)
    kp, kv, ka = jax.random.split(key, 3)

    BS, FR = 2, 8            # small batch / frame count for the smoke test
    params = prepare_params(init_params(kp))

    visual_inputs = jax.random.normal(kv, (BS, FR, INPUT_SIZE), jnp.float32)
    audio_inputs = jax.random.normal(ka, (BS, FR, AUDIO_INPUT_SIZE), jnp.float32)

    fwd = jax.jit(model_forward)
    out = fwd(visual_inputs, audio_inputs, params)
    out = jax.block_until_ready(out)
    assert out.shape == (BS, NUM_CLASSES + 1)
    assert bool(jnp.all(jnp.isfinite(out)))
    print("KERNEL_OK")
</pallas_src>

<mosaic_0001>
module attributes {stable_mosaic.version = 11 : i64} {
  func.func @fc_sigmoid_kernel(%arg0: i32, %arg1: memref<2x4096xf32, #tpu.memory_space<vmem>>, %arg2: memref<18x4096xf32, #tpu.memory_space<vmem>>, %arg3: memref<1x18xf32, #tpu.memory_space<vmem>>, %arg4: memref<2x18xf32, #tpu.memory_space<vmem>>) attributes {dimension_semantics = [#tpu.dimension_semantics<arbitrary>], iteration_bounds = array<i64: 8>, scalar_prefetch = 0 : i64, scratch_operands = 0 : i64, tpu.core_type = #tpu.core_type<tc>, window_params = [{transform_indices = @transform_0, window_bounds = array<i64: 2, 4096>}, {transform_indices = @transform_1, window_bounds = array<i64: 18, 4096>}, {pipeline_mode = #tpu.pipeline_mode<synchronous>, transform_indices = @transform_2, window_bounds = array<i64: 1, 18>}, {pipeline_mode = #tpu.pipeline_mode<synchronous>, transform_indices = @transform_3, window_bounds = array<i64: 2, 18>}]} {
    %c0_i32 = arith.constant 0 : i32
    %0 = arith.cmpi eq, %arg0, %c0_i32 : i32
    %1 = arith.extui %0 : i1 to i32
    %c0_i32_0 = arith.constant 0 : i32
    %2 = arith.cmpi ne, %1, %c0_i32_0 : i32
    scf.if %2 {
      %cst_9 = arith.constant 0.000000e+00 : f32
      %12 = vector.broadcast %cst_9 : f32 to vector<2x18xf32>
      %c0_10 = arith.constant 0 : index
      %c0_11 = arith.constant 0 : index
      %13 = vector.load %arg4[%c0_10, %c0_11] : memref<2x18xf32, #tpu.memory_space<vmem>>, vector<2x18xf32>
      tpu.vector_store %arg4[%c0_10, %c0_11], %12 {strides = array<i32>} : memref<2x18xf32, #tpu.memory_space<vmem>>, vector<2x18xf32>,
    } else {
    }
    %c0 = arith.constant 0 : index
    %c0_1 = arith.constant 0 : index
    %3 = vector.load %arg4[%c0, %c0_1] : memref<2x18xf32, #tpu.memory_space<vmem>>, vector<2x18xf32>
    %c0_2 = arith.constant 0 : index
    %c0_3 = arith.constant 0 : index
    %4 = vector.load %arg1[%c0_2, %c0_3] : memref<2x4096xf32, #tpu.memory_space<vmem>>, vector<2x4096xf32>
    %c0_4 = arith.constant 0 : index
    %c0_5 = arith.constant 0 : index
    %5 = vector.load %arg2[%c0_4, %c0_5] : memref<18x4096xf32, #tpu.memory_space<vmem>>, vector<18x4096xf32>
    %cst = arith.constant dense<0.000000e+00> : vector<2x18xf32>
    %6 = tpu.matmul %4, %5, %cst {dimension_numbers = #tpu.dot_dimension_numbers<[1], [1], [0], [0], [0, 0, 1, 0], [], []>} : vector<2x4096xf32>, vector<18x4096xf32>, vector<2x18xf32> -> vector<2x18xf32>
    %7 = arith.addf %3, %6 : vector<2x18xf32>
    %c0_6 = arith.constant 0 : index
    %c0_7 = arith.constant 0 : index
    %8 = vector.load %arg4[%c0_6, %c0_7] : memref<2x18xf32, #tpu.memory_space<vmem>>, vector<2x18xf32>
    tpu.vector_store %arg4[%c0_6, %c0_7], %7 {strides = array<i32>} : memref<2x18xf32, #tpu.memory_space<vmem>>, vector<2x18xf32>,
    %c7_i32 = arith.constant 7 : i32
    %9 = arith.cmpi eq, %arg0, %c7_i32 : i32
    %10 = arith.extui %9 : i1 to i32
    %c0_i32_8 = arith.constant 0 : i32
    %11 = arith.cmpi ne, %10, %c0_i32_8 : i32
    scf.if %11 {
      %c0_9 = arith.constant 0 : index
      %c0_10 = arith.constant 0 : index
      %12 = vector.load %arg4[%c0_9, %c0_10] : memref<2x18xf32, #tpu.memory_space<vmem>>, vector<2x18xf32>
      %c0_11 = arith.constant 0 : index
      %c0_12 = arith.constant 0 : index
      %13 = vector.load %arg3[%c0_11, %c0_12] : memref<1x18xf32, #tpu.memory_space<vmem>>, vector<1x18xf32>
      %14 = vector.broadcast %13 : vector<1x18xf32> to vector<2x18xf32>
      %15 = arith.addf %12, %14 : vector<2x18xf32>
      %16 = arith.negf %15 : vector<2x18xf32>
      %17 = math.exp %16 : vector<2x18xf32>
      %cst_13 = arith.constant 1.000000e+00 : f32
      %18 = vector.broadcast %cst_13 : f32 to vector<2x18xf32>
      %19 = arith.addf %18, %17 : vector<2x18xf32>
      %20 = arith.divf %18, %19 : vector<2x18xf32>
      %c0_14 = arith.constant 0 : index
      %c0_15 = arith.constant 0 : index
      %21 = vector.load %arg4[%c0_14, %c0_15] : memref<2x18xf32, #tpu.memory_space<vmem>>, vector<2x18xf32>
      tpu.vector_store %arg4[%c0_14, %c0_15], %20 {strides = array<i32>} : memref<2x18xf32, #tpu.memory_space<vmem>>, vector<2x18xf32>,
    } else {
    }
    return
  }
  func.func @transform_0(%arg0: i32) -> (i32, i32) {
    %c0_i32 = arith.constant 0 : i32
    %c0_i32_0 = arith.constant 0 : i32
    return %c0_i32, %arg0 : i32, i32
  }
  func.func @transform_1(%arg0: i32) -> (i32, i32) {
    %c0_i32 = arith.constant 0 : i32
    %c0_i32_0 = arith.constant 0 : i32
    return %c0_i32, %arg0 : i32, i32
  }
  func.func @transform_2(%arg0: i32) -> (i32, i32) {
    %c0_i32 = arith.constant 0 : i32
    %c0_i32_0 = arith.constant 0 : i32
    %c0_i32_1 = arith.constant 0 : i32
    return %c0_i32, %c0_i32_0 : i32, i32
  }
  func.func @transform_3(%arg0: i32) -> (i32, i32) {
    %c0_i32 = arith.constant 0 : i32
    %c0_i32_0 = arith.constant 0 : i32
    %c0_i32_1 = arith.constant 0 : i32
    return %c0_i32, %c0_i32_0 : i32, i32
  }
}

module attributes {stable_mosaic.version = 11 : i64} {
  func.func @netvlad_kernel(%arg0: i32, %arg1: i32, %arg2: memref<1x8x512xf32, #tpu.memory_space<vmem>>, %arg3: memref<512x64xf32, #tpu.memory_space<vmem>>, %arg4: memref<64x512xf32, #tpu.memory_space<vmem>>, %arg5: memref<2x64xf32, #tpu.memory_space<vmem>>, %arg6: memref<1x64x512xf32, #tpu.memory_space<vmem>>, %arg7: memref<64x512xf32, #tpu.memory_space<vmem>>, %arg8: memref<64x1xf32, #tpu.memory_space<vmem>>) attributes {dimension_semantics = [#tpu.dimension_semantics<parallel>, #tpu.dimension_semantics<arbitrary>], iteration_bounds = array<i64: 2, 1>, scalar_prefetch = 0 : i64, scratch_operands = 2 : i64, tpu.core_type = #tpu.core_type<tc>, window_params = [{transform_indices = @transform_0, window_bounds = array<i64: 1, 8, 512>}, {pipeline_mode = #tpu.pipeline_mode<synchronous>, transform_indices = @transform_1, window_bounds = array<i64: 512, 64>}, {pipeline_mode = #tpu.pipeline_mode<synchronous>, transform_indices = @transform_2, window_bounds = array<i64: 64, 512>}, {pipeline_mode = #tpu.pipeline_mode<synchronous>, transform_indices = @transform_3, window_bounds = array<i64: 2, 64>}, {transform_indices = @transform_4, window_bounds = array<i64: 1, 64, 512>}]} {
    %c0_i32 = arith.constant 0 : i32
    %0 = arith.cmpi eq, %arg1, %c0_i32 : i32
    %1 = arith.extui %0 : i1 to i32
    %c0_i32_0 = arith.constant 0 : i32
    %2 = arith.cmpi ne, %1, %c0_i32_0 : i32
    scf.if %2 {
      %cst_23 = arith.constant 0.000000e+00 : f32
      %35 = vector.broadcast %cst_23 : f32 to vector<64x512xf32>
      %c0_24 = arith.constant 0 : index
      %c0_25 = arith.constant 0 : index
      %36 = vector.load %arg7[%c0_24, %c0_25] : memref<64x512xf32, #tpu.memory_space<vmem>>, vector<64x512xf32>
      tpu.vector_store %arg7[%c0_24, %c0_25], %35 {strides = array<i32>} : memref<64x512xf32, #tpu.memory_space<vmem>>, vector<64x512xf32>,
      %cst_26 = arith.constant 0.000000e+00 : f32
      %37 = vector.broadcast %cst_26 : f32 to vector<64x1xf32>
      %c0_27 = arith.constant 0 : index
      %c0_28 = arith.constant 0 : index
      %38 = vector.load %arg8[%c0_27, %c0_28] : memref<64x1xf32, #tpu.memory_space<vmem>>, vector<64x1xf32>
      tpu.vector_store %arg8[%c0_27, %c0_28], %37 {strides = array<i32>} : memref<64x1xf32, #tpu.memory_space<vmem>>, vector<64x1xf32>,
    } else {
    }
    %c0 = arith.constant 0 : index
    %c0_1 = arith.constant 0 : index
    %c0_2 = arith.constant 0 : index
    %3 = vector.load %arg2[%c0, %c0_1, %c0_2] : memref<1x8x512xf32, #tpu.memory_space<vmem>>, vector<1x8x512xf32>
    %4 = vector.shape_cast %3 : vector<1x8x512xf32> to vector<8x512xf32>
    %c0_3 = arith.constant 0 : index
    %c0_4 = arith.constant 0 : index
    %5 = vector.load %arg3[%c0_3, %c0_4] : memref<512x64xf32, #tpu.memory_space<vmem>>, vector<512x64xf32>
    %cst = arith.constant dense<0.000000e+00> : vector<8x64xf32>
    %6 = tpu.matmul %4, %5, %cst {dimension_numbers = #tpu.dot_dimension_numbers<[1], [0], [0], [1], [0, 0, 1, 1], [], []>} : vector<8x512xf32>, vector<512x64xf32>, vector<8x64xf32> -> vector<8x64xf32>
    %c0_5 = arith.constant 0 : index
    %c0_6 = arith.constant 0 : index
    %7 = vector.load %arg5[%c0_5, %c0_6] : memref<2x64xf32, #tpu.memory_space<vmem>>, vector<1x64xf32>
    %8 = vector.broadcast %7 : vector<1x64xf32> to vector<8x64xf32>
    %9 = arith.mulf %6, %8 : vector<8x64xf32>
    %c1 = arith.constant 1 : index
    %c0_7 = arith.constant 0 : index
    %10 = vector.load %arg5[%c1, %c0_7] : memref<2x64xf32, #tpu.memory_space<vmem>>, vector<1x64xf32>
    %11 = vector.broadcast %10 : vector<1x64xf32> to vector<8x64xf32>
    %12 = arith.addf %9, %11 : vector<8x64xf32>
    %cst_8 = arith.constant dense<0xFF800000> : vector<8xf32>
    %13 = vector.multi_reduction <maximumf>, %12, %cst_8 [1] : vector<8x64xf32> to vector<8xf32>
    %14 = vector.shape_cast %13 : vector<8xf32> to vector<8x1xf32>
    %15 = vector.broadcast %14 : vector<8x1xf32> to vector<8x64xf32>
    %16 = arith.subf %12, %15 : vector<8x64xf32>
    %17 = math.exp %16 : vector<8x64xf32>
    %cst_9 = arith.constant dense<0.000000e+00> : vector<8xf32>
    %18 = vector.multi_reduction <add>, %17, %cst_9 [1] : vector<8x64xf32> to vector<8xf32>
    %19 = vector.shape_cast %18 : vector<8xf32> to vector<8x1xf32>
    %20 = tpu.reciprocal %19 {approx = true} : vector<8x1xf32> -> vector<8x1xf32>
    %21 = vector.broadcast %20 : vector<8x1xf32> to vector<8x64xf32>
    %22 = arith.mulf %17, %21 : vector<8x64xf32>
    %c0_10 = arith.constant 0 : index
    %c0_11 = arith.constant 0 : index
    %23 = vector.load %arg7[%c0_10, %c0_11] : memref<64x512xf32, #tpu.memory_space<vmem>>, vector<64x512xf32>
    %cst_12 = arith.constant dense<0.000000e+00> : vector<64x512xf32>
    %24 = tpu.matmul %22, %4, %cst_12 {dimension_numbers = #tpu.dot_dimension_numbers<[0], [0], [1], [1], [0, 1, 1, 1], [], []>} : vector<8x64xf32>, vector<8x512xf32>, vector<64x512xf32> -> vector<64x512xf32>
    %25 = arith.addf %23, %24 : vector<64x512xf32>
    %c0_13 = arith.constant 0 : index
    %c0_14 = arith.constant 0 : index
    %26 = vector.load %arg7[%c0_13, %c0_14] : memref<64x512xf32, #tpu.memory_space<vmem>>, vector<64x512xf32>
    tpu.vector_store %arg7[%c0_13, %c0_14], %25 {strides = array<i32>} : memref<64x512xf32, #tpu.memory_space<vmem>>, vector<64x512xf32>,
    %cst_15 = arith.constant 1.000000e+00 : f32
    %27 = vector.broadcast %cst_15 : f32 to vector<8x1xf32>
    %c0_16 = arith.constant 0 : index
    %c0_17 = arith.constant 0 : index
    %28 = vector.load %arg8[%c0_16, %c0_17] : memref<64x1xf32, #tpu.memory_space<vmem>>, vector<64x1xf32>
    %cst_18 = arith.constant dense<0.000000e+00> : vector<64x1xf32>
    %29 = tpu.matmul %22, %27, %cst_18 {dimension_numbers = #tpu.dot_dimension_numbers<[0], [0], [1], [1], [0, 1, 1, 1], [], []>} : vector<8x64xf32>, vector<8x1xf32>, vector<64x1xf32> -> vector<64x1xf32>
    %30 = arith.addf %28, %29 : vector<64x1xf32>
    %c0_19 = arith.constant 0 : index
    %c0_20 = arith.constant 0 : index
    %31 = vector.load %arg8[%c0_19, %c0_20] : memref<64x1xf32, #tpu.memory_space<vmem>>, vector<64x1xf32>
    tpu.vector_store %arg8[%c0_19, %c0_20], %30 {strides = array<i32>} : memref<64x1xf32, #tpu.memory_space<vmem>>, vector<64x1xf32>,
    %c0_i32_21 = arith.constant 0 : i32
    %32 = arith.cmpi eq, %arg1, %c0_i32_21 : i32
    %33 = arith.extui %32 : i1 to i32
    %c0_i32_22 = arith.constant 0 : i32
    %34 = arith.cmpi ne, %33, %c0_i32_22 : i32
    scf.if %34 {
      %c0_23 = arith.constant 0 : index
      %c0_24 = arith.constant 0 : index
      %35 = vector.load %arg7[%c0_23, %c0_24] : memref<64x512xf32, #tpu.memory_space<vmem>>, vector<64x512xf32>
      %c0_25 = arith.constant 0 : index
      %c0_26 = arith.constant 0 : index
      %36 = vector.load %arg8[%c0_25, %c0_26] : memref<64x1xf32, #tpu.memory_space<vmem>>, vector<64x1xf32>
      %c0_27 = arith.constant 0 : index
      %c0_28 = arith.constant 0 : index
      %37 = vector.load %arg4[%c0_27, %c0_28] : memref<64x512xf32, #tpu.memory_space<vmem>>, vector<64x512xf32>
      %38 = vector.broadcast %36 : vector<64x1xf32> to vector<64x512xf32>
      %39 = arith.mulf %38, %37 : vector<64x512xf32>
      %40 = arith.subf %35, %39 : vector<64x512xf32>
      %41 = arith.mulf %40, %40 : vector<64x512xf32>
      %cst_29 = arith.constant dense<0.000000e+00> : vector<64xf32>
      %42 = vector.multi_reduction <add>, %41, %cst_29 [1] : vector<64x512xf32> to vector<64xf32>
      %43 = vector.shape_cast %42 : vector<64xf32> to vector<64x1xf32>
      %cst_30 = arith.constant 1.000000e-24 : f32
      %44 = vector.broadcast %cst_30 : f32 to vector<64x1xf32>
      %45 = arith.maximumf %43, %44 : vector<64x1xf32>
      %46 = math.rsqrt %45 : vector<64x1xf32>
      %47 = arith.mulf %46, %46 : vector<64x1xf32>
      %48 = arith.mulf %43, %47 : vector<64x1xf32>
      %49 = vector.shape_cast %48 : vector<64x1xf32> to vector<1x64x1xf32>
      %cst_31 = arith.constant dense<0.000000e+00> : vector<1xf32>
      %50 = vector.multi_reduction <add>, %49, %cst_31 [1, 2] : vector<1x64x1xf32> to vector<1xf32>
      %51 = vector.shape_cast %50 : vector<1xf32> to vector<1x1x1xf32>
      %52 = vector.extract %51[0, 0, 0] : f32 from vector<1x1x1xf32>
      %cst_32 = arith.constant 1.000000e-24 : f32
      %53 = arith.maximumf %52, %cst_32 : f32
      %54 = math.rsqrt %53 : f32
      %55 = vector.broadcast %54 : f32 to vector<64x1xf32>
      %56 = arith.mulf %46, %55 : vector<64x1xf32>
      %57 = vector.broadcast %56 : vector<64x1xf32> to vector<64x512xf32>
      %58 = arith.mulf %40, %57 : vector<64x512xf32>
      %c0_33 = arith.constant 0 : index
      %c0_34 = arith.constant 0 : index
      %c0_35 = arith.constant 0 : index
      %59 = vector.load %arg6[%c0_33, %c0_34, %c0_35] : memref<1x64x512xf32, #tpu.memory_space<vmem>>, vector<1x64x512xf32>
      %60 = vector.shape_cast %59 : vector<1x64x512xf32> to vector<64x512xf32>
      %61 = vector.shape_cast %58 : vector<64x512xf32> to vector<1x64x512xf32>
      tpu.vector_store %arg6[%c0_33, %c0_34, %c0_35], %61 {strides = array<i32>} : memref<1x64x512xf32, #tpu.memory_space<vmem>>, vector<1x64x512xf32>,
    } else {
    }
    return
  }
  func.func @transform_0(%arg0: i32, %arg1: i32) -> (i32, i32, i32) {
    %c0_i32 = arith.constant 0 : i32
    %c0_i32_0 = arith.constant 0 : i32
    return %arg0, %arg1, %c0_i32 : i32, i32, i32
  }
  func.func @transform_1(%arg0: i32, %arg1: i32) -> (i32, i32) {
    %c0_i32 = arith.constant 0 : i32
    %c0_i32_0 = arith.constant 0 : i32
    %c0_i32_1 = arith.constant 0 : i32
    return %c0_i32, %c0_i32_0 : i32, i32
  }
  func.func @transform_2(%arg0: i32, %arg1: i32) -> (i32, i32) {
    %c0_i32 = arith.constant 0 : i32
    %c0_i32_0 = arith.constant 0 : i32
    %c0_i32_1 = arith.constant 0 : i32
    return %c0_i32, %c0_i32_0 : i32, i32
  }
  func.func @transform_3(%arg0: i32, %arg1: i32) -> (i32, i32) {
    %c0_i32 = arith.constant 0 : i32
    %c0_i32_0 = arith.constant 0 : i32
    %c0_i32_1 = arith.constant 0 : i32
    return %c0_i32, %c0_i32_0 : i32, i32
  }
  func.func @transform_4(%arg0: i32, %arg1: i32) -> (i32, i32, i32) {
    %c0_i32 = arith.constant 0 : i32
    %c0_i32_0 = arith.constant 0 : i32
    %c0_i32_1 = arith.constant 0 : i32
    return %arg0, %c0_i32, %c0_i32_0 : i32, i32, i32
  }
}

</mosaic_0001>

<bundles_post_ra>
// kernel: model_forward.3
= control target key start
LH: loop header
LB: loop body
LE: loop exit
PB: predicated region body
PF: predicated region fallthrough
CT: control target
= control target key end

     0   :  { %8 = vsyncpa [#allocation3], 0  ;;  %s2337_s0 = inlined_call_operand.vmem [shape: f32[2,32768], index: 0, kind: input, shape index: {}]   ;;  %s2338_s1 = inlined_call_operand.hbm [shape: f32[18,32768], index: 1, kind: input, shape index: {}]   ;;  %s2339_s2 = inlined_call_operand.hbm [shape: f32[1,18], index: 2, kind: input, shape index: {}]   ;;  %s2340_s3 = inlined_call_operand.hbm [shape: f32[2,18], index: 3, kind: output, shape index: {}]  }
   0x1   :  { %10 = vsyncpa [#allocation3 + $0x1], 0 }
   0x2   :  { %11 = vsyncpa [#allocation6], 0 }
   0x3   :  { %12 = vsyncpa [#allocation4], 0  ;;  %s2037_s12 = smov 0   ;;  %s2039_s13 = smov 0  }
   0x4   :  { %s2041_s14 = smov 0   ;;  %s2043_s15 = smov 0  }
   0x5 LB: > { %s2056_s16 = sadd.s32 4294967295, %s2007_s15   ;;  %s2059_s17 = sadd.s32 1, %s2007_s15   ;;  %s2007_s15 = sphi %s2043_s15, %s2359_s15   ;;  %s2003_s14 = sphi %s2041_s14, %s2358_s14   ;;  %s1999_s13 = sphi %s2039_s13, %s2357_s13   ;;  %s1995_s12 = sphi %s2037_s12, %s2356_s12  }
   0x6   : > { %s48_s18 = ssub.s32 %s2007_s15, %s2059_s17  ;;  %s51_s19 = sadd.s32 1, %s2003_s14 }
   0x7   : > { %p49_p0 = scmp.eq.s32.totalorder %s48_s18, 0  ;;  %p58_p1 = scmp.ne.s32.totalorder %s2003_s14, %s1999_s13 }
   0x8   : > { %p59_p2 = scmp.eq.s32.totalorder %s2007_s15, 0  ;;  %p64_p3 = scmp.ne.s32.totalorder %s1999_s13, %s1995_s12 }
   0x9   : > { %s2069_s20 = scalar_select %p49_p0, %s2003_s14, %s51_s19  }
   0xa   : > { %p2071_p4 = por %p59_p2, %p58_p1  ;;  %p2341_p5 = scmp.eq.s32.totalorder %s2056_s16, 0 }
   0xb   : > { %p1723_p6 = scmp.ge.s32.totalorder %s2007_s15, 1  ;;  %p117_p7 = scmp.lt.s32.totalorder %s2007_s15, 9 }
   0xc   : > { %p2080_p8 = por %p2341_p5, %p64_p3  ;;  %s2009_s24 = smov [#allocation5]  }
   0xd   : > { %p2085_p10 = pnand %p1723_p6, %p117_p7  ;;  %s130_s25 = sshll.u32 %s2009_s24, 4  ;;  %s131_s25 = int_to_ptr.vmem [resolvable:$true] %s130_s25 }
   0xe   : > { %s2346_s22 = scalar_select %p2080_p8, 1, 0 }
   0xf   : > { %s2347_s23 = scalar_select %p2085_p10, 1, 0 }
  0x10   : > { %p1817_p11 = pneg %p2085_p10  ;;  %p1826_p12 = scmp.lt.s32.totalorder %s2007_s15, 8 }
  0x11   : > { %s150_s26 = sand.u32 1, %s2003_s14   ;;  %s1740_s30 = sshll.u32 %s2007_s15, 12 }
  0x12   : > { %p2095_p13 = pnand %p1817_p11, %p2341_p5  ;;  %p2101_p0 = pnand %p1826_p12, %p2071_p4 }
  0x13   : > { %s1805_s29 = smul.u32 768, %s150_s26  ;;  %s1881_s6 = scalar_lea.hbm %s2339_s2, 16 }
  0x14   : > { %s2349_s28 = scalar_select %p2101_p0, 1, 0 }
  0x15   : > { %p1882_p1 = scmp.ne.s32.totalorder %s2339_s2, %s1881_s6  ;;  %p1883_p2 = pneg %p2095_p13 }
  0x16   : > { %p1888_p4 = scmp.lt.u32.totalorder %s1881_s6, %s2339_s2 }
  0x17   : > { %p1884_p3 = pnand %p1883_p2, %p1882_p1 }
  0x19   : > { %p1885_p6 = pneg %p1884_p3 }
  0x1b   : > { %p1890_p7 = pnand %p1888_p4, %p1885_p6 }
  0x1d   : > { %1893 = shalt.err (!%p1890_p7)
}
  0x1e   : > { %s1894_s11 = scalar_lea.vmem %s131_s25, 16  ;;  %s1901_s12 = scalar_lea.vmem %s131_s25, 32 }
  0x1f   : > { %p1895_p11 = scmp.ne.s32.totalorder %s131_s25, %s1894_s11  ;;  %p1902_p5 = scmp.lt.s32.totalorder %s131_s25, %s131_s25 }
  0x20   : > { %p1903_p8 = scmp.lt.s32.totalorder %s1901_s12, %s1894_s11 }
  0x21   : > { %p1897_p12 = pnand %p1895_p11, %p1883_p2 }
  0x22   : > { %p1904_p10 = por %p1903_p8, %p1902_p5 }
  0x23   : > { %p1898_p9 = pneg %p1897_p12 }
  0x25   : > { %p1905_p0 = pnand %p1904_p10, %p1898_p9 }
  0x27   : > { %1908 = shalt.err (!%p1905_p0)
}
  0x28   : > { %1820 = dma.hbm_to_vmem [thread:$0]  (!%p2095_p13), %s2339_s2, 16, %s131_s25, [#allocation6]  }
  0x29   : > { %s2125_s24 = scalar_lea.hbm %s2338_s1, %s1740_s30  ;;  %s154_s4 = scalar_lea.vmem [#allocation2], %s1805_s29 }
  0x2a   : > { %s161_s5 = sshll.u32 %s154_s4, 4  ;;  %s2129_s27 = scalar_lea.sflag [#allocation3], %s150_s26  ;;  %s2127_s5 = int_to_ptr.vmem [resolvable:$true] %s161_s5 }
  0x2b   : > { %s1909_s6 = scalar_lea.hbm %s2125_s24, 12288  ;;  %p2350_p8 = scmp.ne.s32.totalorder %s2349_s28, 0 }
  0x2c   : > { %p1910_p5 = scmp.ne.s32.totalorder %s2125_s24, %s1909_s6  ;;  %s1914_s7 = scalar_lea.hbm %s2338_s1, 98304 }
  0x2d   : > { %p1911_p9 = pneg %p2350_p8  ;;  %p1915_p0 = scmp.lt.u32.totalorder %s2125_s24, %s2338_s1 }
  0x2e   : > { %p1916_p1 = scmp.lt.u32.totalorder %s1914_s7, %s1909_s6  ;;  %p1918_p3 = scmp.lt.u32.totalorder %s1909_s6, %s2125_s24 }
  0x2f   : > { %p1912_p10 = pnand %p1911_p9, %p1910_p5 }
  0x30   : > { %p1917_p2 = por %p1916_p1, %p1915_p0 }
  0x31   : > { %p1913_p13 = pneg %p1912_p10 }
  0x32   : > { %p1919_p6 = por %p1918_p3, %p1917_p2 }
  0x34   : > { %p1920_p4 = pnand %p1919_p6, %p1913_p13 }
  0x36   : > { %1923 = shalt.err (!%p1920_p4)
}
  0x37   : > { %s1924_s26 = scalar_lea.vmem %s2127_s5, 12288  ;;  %s2010_s29 = smov [#allocation2]  }
  0x38   : > { %p1925_p7 = scmp.ne.s32.totalorder %s2127_s5, %s1924_s26  ;;  %s1929_s10 = sshll.u32 %s2010_s29, 4  ;;  %s1930_s10 = int_to_ptr.vmem [resolvable:$false] %s1929_s10 }
  0x39   : > { %s1931_s11 = scalar_lea.vmem %s1930_s10, 24576  ;;  %p1932_p5 = scmp.lt.s32.totalorder %s2127_s5, %s1930_s10 }
  0x3a   : > { %p1927_p11 = pnand %p1925_p7, %p1911_p9  ;;  %p1933_p10 = scmp.lt.s32.totalorder %s1931_s11, %s1924_s26 }
  0x3c   : > { %p1928_p12 = pneg %p1927_p11  ;;  %p1934_p0 = por %p1933_p10, %p1932_p5 }
  0x3e   : > { %p1935_p1 = pnand %p1934_p0, %p1928_p12 }
  0x40   : > { %1938 = shalt.err (!%p1935_p1)
}
  0x41   : > { %s2011_s12 = smov 32768   ;;  %s2012_s15 = smov 4096  }
  0x42   : > { %s2013_s18 = smov 256   ;;  %p2351_p9 = scmp.ne.s32.totalorder %s2347_s23, 0 }
  0x43   : > { %1824 = dma.hbm_to_vmem [thread:$0]  (!%p2350_p8), %s2125_s24, 12288, %s2127_s5, %s2129_s27, %s2011_s12, %s2012_s15, %s2013_s18  }
  0x44   : > { %173 = sbr.rel (%p2351_p9) target bundleno = 468 (0x1d4), region = 32  ;;  %s175_s19 = sand.u32 (!%p2351_p9), 1, %s1999_s13  }
  0x45   : > { %s1806_s21 = smul.u32 (!%p2351_p9), 768, %s175_s19  ;;  %s176_s4 = scalar_lea.sflag (!%p2351_p9), [#allocation3], %s175_s19 }
  0x46   : > { %p2352_p13 = scmp.ne.s32.totalorder (!%p2351_p9), %s2346_s22, 0 }
  0x47   : > { %s2160_s6 = scalar_lea.vmem (!%p2351_p9), [#allocation2], %s1806_s21 }
  0x4b   : > { %1982 = dma.done.wait (%p2352_p13), %s176_s4, 12288  }
  0x4c   : > { %1984 = vsyncadd (%p2352_p13), %s176_s4, 4294955008  ;;  %p2353_p2 = scmp.eq.s32.totalorder %s2056_s16, 0 }
  0x4e   : > { %1986 = dma.done.wait (%p2353_p2), [#allocation6], 16   ;;  %p2354_p8 = pmov %p2353_p2 }
  0x4f   : > { %s1730_s23 = sshll.u32 %s2056_s16, 5  ;;  %p2355_p6 = scmp.ne.s32.totalorder %s2056_s16, 0 }
  0x50   : > { %1988 = vsyncadd (%p2354_p8), [#allocation6], 4294967280  ;;  %p207_p3 = scmp.lt.s32.totalorder %s1730_s23, 255  ;;  %vm217_vm0 = vcmask (!%p2355_p6), 140288   ;;  %v2014_v0 = vmov (!%p2355_p6), 0.0  }
  0x51   : > { %216 = sbr.rel (%p2355_p6) target bundleno = 88 (0x58), region = 44  ;;  %218 = vst.msk [vmem:[#allocation7] sm:$0x3] (!%p2355_p6), %vm217_vm0, %v2014_v0 }
  0x52   : > { %s2361_s23 = smov (!%p207_p3, %s1730_s23), 255 }
  0x53   : > { %s1731_s28 = sshll.u32 %s2361_s23, 1 }
  0x54   : > { %s2174_s27 = scalar_lea.vmem %s2337_s0, %s1731_s28 }
  0x58 PF: > { %v229_v1 = vld [vmem:[%s2160_s6 + $0x8] sm:$0xff]  ;;  %v228_v3 = vld [vmem:[%s2160_s6] sm:$0xff]  ;;  %v336_v4 = vlaneseq  ;;  %v231_v7 = vld [vmem:[%s2160_s6 + $0x18] sm:$0xff]  ;;  %v2015_v9 = vmov 1983009808   ;;  %vm1621_vm1 = vcmask 140288  }
  0x59   : > { %v261_v2 = vld [vmem:[%s2160_s6 + $0x108] sm:$0xff]  ;;  %v260_v6 = vld [vmem:[%s2160_s6 + $0x100] sm:$0xff]  ;;  %v263_v8 = vld [vmem:[%s2160_s6 + $0x118] sm:$0xff]  ;;  %v334_v10 = vunpack.c.l.s4 %v2015_v9  ;;  %p1733_p4 = scmp.ne.s32.totalorder %s2056_s16, 7 }
  0x5a   : > { %v1741_v5 = vpack.c.bf16 %v261_v2, %v229_v1  ;;  %v1743_v11 = vpack.c.bf16 %v260_v6, %v228_v3  ;;  %v1745_v12 = vpack.c.bf16 %v263_v8, %v231_v7  ;;  %v230_v13 = vld [vmem:[%s2160_s6 + $0x10] sm:$0xff]  ;;  %v293_v15 = vld [vmem:[%s2160_s6 + $0x208] sm:$0x3]  ;;  %v337_v16 = vshrl.u32 %v336_v4, 7  ;;  %v295_v18 = vld [vmem:[%s2160_s6 + $0x218] sm:$0x3] }
  0x5b   : > { %v262_v14 = vld [vmem:[%s2160_s6 + $0x110] sm:$0xff]  ;;  %v335_v19 = vunpack.c.0.s8 %v334_v10  ;;  %v220_v20 = vld [vmem:[%s2174_s27] sm:$0xff]  ;;  %v233_v23 = vld [vmem:[%s2160_s6 + $0x28] sm:$0xff] }
  0x5c   : > { %1742 = vmatprep.subr.bf16.mxu0 %v1741_v5  ;;  %v1747_v17 = vpack.c.bf16 %v262_v14, %v230_v13  ;;  %1746 = vmatprep.subr.bf16.mxu1 %v1745_v12  ;;  %v332_v22 = vcombine.high %v220_v20, %v220_v20  ;;  %v265_v24 = vld [vmem:[%s2160_s6 + $0x128] sm:$0xff]  ;;  %v235_v27 = vld [vmem:[%s2160_s6 + $0x38] sm:$0xff]  ;;  %v292_v30 = vld [vmem:[%s2160_s6 + $0x200] sm:$0x3] }
  0x5d   : > { %1744 = vmatpush1.bf16.xpose.msra.mxu0 %v1743_v11  ;;  %v2189_v21 = vsub.s32 %v335_v19, %v337_v16  ;;  %v267_v28 = vld [vmem:[%s2160_s6 + $0x138] sm:$0xff]  ;;  %v221_v29 = vld [vmem:[%s2174_s27 + $0x8] sm:$0xff]  ;;  %v1749_v33 = vpack.c.bf16 %v265_v24, %v233_v23  ;;  %v232_v34 = vld [vmem:[%s2160_s6 + $0x20] sm:$0xff] }
  0x5e   : > { %1748 = vmatpush1.bf16.xpose.msra.mxu1 %v1747_v17  ;;  %504 = vmatprep.subr.mxu0 %v293_v15  ;;  %v264_v35 = vld [vmem:[%s2160_s6 + $0x120] sm:$0xff]  ;;  %v349_v36 = vcombine.high %v221_v29, %v221_v29  ;;  %v294_v37 = vld [vmem:[%s2160_s6 + $0x210] sm:$0x3]  ;;  %v1753_v38 = vpack.c.bf16 %v267_v28, %v235_v27  ;;  %v297_v45 = vld [vmem:[%s2160_s6 + $0x228] sm:$0x3] }
  0x5f   : > { %574 = vmatprep.subr.mxu1 %v295_v18  ;;  %v339_v25 = vrot.slane %v220_v20, %v2189_v21  ;;  %v346_v26 = vrot.slane %v332_v22, %v2189_v21  ;;  %v234_v39 = vld [vmem:[%s2160_s6 + $0x30] sm:$0xff]  ;;  %v356_v41 = vrot.slane %v221_v29, %v2189_v21  ;;  %v1751_v43 = vpack.c.bf16 %v264_v35, %v232_v34  ;;  %v299_v47 = vld [vmem:[%s2160_s6 + $0x238] sm:$0x3]  ;;  %v237_v50 = vld [vmem:[%s2160_s6 + $0x48] sm:$0xff] }
  0x60   : > { %v266_v40 = vld [vmem:[%s2160_s6 + $0x130] sm:$0xff]  ;;  %v363_v42 = vrot.slane %v349_v36, %v2189_v21  ;;  %v269_v51 = vld [vmem:[%s2160_s6 + $0x148] sm:$0xff]  ;;  %v239_v52 = vld [vmem:[%s2160_s6 + $0x58] sm:$0xff] }
  0x61   : > { %v347_v31 = vcombine.high %v339_v25, %v339_v25  ;;  %v348_v32 = vcombine.high %v346_v26, %v346_v26  ;;  %v1755_v44 = vpack.c.bf16 %v266_v40, %v234_v39  ;;  %v364_v46 = vcombine.high %v356_v41, %v356_v41  ;;  %v222_v49 = vld [vmem:[%s2174_s27 + $0x10] sm:$0xff]  ;;  %v271_v53 = vld [vmem:[%s2160_s6 + $0x158] sm:$0xff]  ;;  %v296_v55 = vld [vmem:[%s2160_s6 + $0x220] sm:$0x3] }
  0x62   : > { %v365_v48 = vcombine.high %v363_v42, %v363_v42  ;;  %v366_v54 = vcombine.high %v222_v49, %v222_v49  ;;  %v1757_v56 = vpack.c.bf16 %v269_v51, %v237_v50  ;;  %v236_v57 = vld [vmem:[%s2160_s6 + $0x40] sm:$0xff]  ;;  %v298_v59 = vld [vmem:[%s2160_s6 + $0x230] sm:$0x3]  ;;  %v1761_v60 = vpack.c.bf16 %v271_v53, %v239_v52  ;;  %v301_v3 = vld [vmem:[%s2160_s6 + $0x248] sm:$0x3] }
  0x63   : > { %564 = vmatprep.mubr.f32.mxu0 %v347_v31  ;;  %634 = vmatprep.mubr.f32.mxu1 %v348_v32  ;;  %v268_v58 = vld [vmem:[%s2160_s6 + $0x140] sm:$0xff]  ;;  %v238_v61 = vld [vmem:[%s2160_s6 + $0x50] sm:$0xff]  ;;  %v373_v63 = vrot.slane %v222_v49, %v2189_v21  ;;  %v303_v5 = vld [vmem:[%s2160_s6 + $0x258] sm:$0x3] }
  0x64   : > { %v270_v62 = vld [vmem:[%s2160_s6 + $0x150] sm:$0xff]  ;;  %v380_v0 = vrot.slane %v366_v54, %v2189_v21  ;;  %v1759_v1 = vpack.c.bf16 %v268_v58, %v236_v57  ;;  %v223_v7 = vld [vmem:[%s2174_s27 + $0x18] sm:$0xff]  ;;  %v241_v8 = vld [vmem:[%s2160_s6 + $0x68] sm:$0xff] }
  0x65   : > { %505 = vmatpush1.xpose.msra.mxu0 %v292_v30  ;;  %v1763_v2 = vpack.c.bf16 %v270_v62, %v238_v61  ;;  %v381_v4 = vcombine.high %v373_v63, %v373_v63  ;;  %v273_v9 = vld [vmem:[%s2160_s6 + $0x168] sm:$0xff]  ;;  %v243_v10 = vld [vmem:[%s2160_s6 + $0x78] sm:$0xff]  ;;  %v383_v12 = vcombine.high %v223_v7, %v223_v7  ;;  %v300_v13 = vld [vmem:[%s2160_s6 + $0x240] sm:$0x3]  ;;  %v390_v22 = vrot.slane %v223_v7, %v2189_v21 }
  0x66   : > { %575 = vmatpush1.xpose.msra.mxu1 %v294_v37  ;;  %1750 = vmatprep.subr.bf16.mxu0 %v1749_v33  ;;  %v382_v6 = vcombine.high %v380_v0, %v380_v0  ;;  %v275_v11 = vld [vmem:[%s2160_s6 + $0x178] sm:$0xff]  ;;  %v1765_v14 = vpack.c.bf16 %v273_v9, %v241_v8  ;;  %v240_v15 = vld [vmem:[%s2160_s6 + $0x60] sm:$0xff]  ;;  %v302_v17 = vld [vmem:[%s2160_s6 + $0x250] sm:$0x3] }
  0x67   : > { %1754 = vmatprep.subr.bf16.mxu1 %v1753_v38  ;;  %v272_v16 = vld [vmem:[%s2160_s6 + $0x160] sm:$0xff]  ;;  %v1769_v18 = vpack.c.bf16 %v275_v11, %v243_v10  ;;  %v242_v19 = vld [vmem:[%s2160_s6 + $0x70] sm:$0xff]  ;;  %v397_v23 = vrot.slane %v383_v12, %v2189_v21  ;;  %v398_v27 = vcombine.high %v390_v22, %v390_v22  ;;  %v307_v28 = vld [vmem:[%s2160_s6 + $0x278] sm:$0x3] }
  0x68   : > { %565 = vmatmul.mubr.f32.vlgmr.msra.gmra.mrb[0].mxu0 %v339_v25  ;;  %v274_v20 = vld [vmem:[%s2160_s6 + $0x170] sm:$0xff]  ;;  %v1767_v24 = vpack.c.bf16 %v272_v16, %v240_v15  ;;  %v224_v30 = vld [vmem:[%s2174_s27 + $0x20] sm:$0xff]  ;;  %v245_v31 = vld [vmem:[%s2160_s6 + $0x88] sm:$0xff] }
  0x69   : > { %635 = vmatmul.mubr.f32.vlgmr.msra.gmra.mrb[0].mxu1 %v346_v26  ;;  %1752 = vmatpush1.bf16.xpose.msra.mxu0 %v1751_v43  ;;  %v1771_v25 = vpack.c.bf16 %v274_v20, %v242_v19  ;;  %v305_v26 = vld [vmem:[%s2160_s6 + $0x268] sm:$0x3]  ;;  %v399_v29 = vcombine.high %v397_v23, %v397_v23  ;;  %v247_v33 = vld [vmem:[%s2160_s6 + $0x98] sm:$0xff]  ;;  %v400_v35 = vcombine.high %v224_v30, %v224_v30  ;;  %v304_v36 = vld [vmem:[%s2160_s6 + $0x260] sm:$0x3] }
  0x6a   : > { %1756 = vmatpush1.bf16.xpose.msra.mxu1 %v1755_v44  ;;  %644 = vmatprep.subr.mxu0 %v297_v45  ;;  %v277_v32 = vld [vmem:[%s2160_s6 + $0x188] sm:$0xff]  ;;  %v279_v34 = vld [vmem:[%s2160_s6 + $0x198] sm:$0xff]  ;;  %v244_v38 = vld [vmem:[%s2160_s6 + $0x80] sm:$0xff]  ;;  %v407_v44 = vrot.slane %v224_v30, %v2189_v21 }
  0x6b   : > { %714 = vmatprep.subr.mxu1 %v299_v47  ;;  %704 = vmatprep.mubr.f32.mxu0 %v364_v46  ;;  %v1773_v37 = vpack.c.bf16 %v277_v32, %v245_v31  ;;  %v276_v39 = vld [vmem:[%s2160_s6 + $0x180] sm:$0xff]  ;;  %v306_v40 = vld [vmem:[%s2160_s6 + $0x270] sm:$0x3]  ;;  %v414_v45 = vrot.slane %v400_v35, %v2189_v21  ;;  %v311_v50 = vld [vmem:[%s2160_s6 + $0x298] sm:$0x3] }
  0x6c   : > { %774 = vmatprep.mubr.f32.mxu1 %v365_v48  ;;  %v278_v43 = vld [vmem:[%s2160_s6 + $0x190] sm:$0xff]  ;;  %v1775_v46 = vpack.c.bf16 %v276_v39, %v244_v38  ;;  %v309_v48 = vld [vmem:[%s2160_s6 + $0x288] sm:$0x3]  ;;  %v415_v49 = vcombine.high %v407_v44, %v407_v44  ;;  %v308_v58 = vld [vmem:[%s2160_s6 + $0x280] sm:$0x3] }
  0x6d   : > { %v416_v51 = vcombine.high %v414_v45, %v414_v45  ;;  %v225_v52 = vld [vmem:[%s2174_s27 + $0x28] sm:$0xff]  ;;  %v280_v61 = vld [vmem:[%s2160_s6 + $0x1a0] sm:$0xff]  ;;  %v310_v62 = vld [vmem:[%s2160_s6 + $0x290] sm:$0x3] }
  0x6e   : > { %v249_v53 = vld [vmem:[%s2160_s6 + $0xa8] sm:$0xff]  ;;  %v417_v57 = vcombine.high %v225_v52, %v225_v52  ;;  %v315_v8 = vld [vmem:[%s2160_s6 + $0x2b8] sm:$0x3]  ;;  %v226_v10 = vld [vmem:[%s2174_s27 + $0x30] sm:$0xff] }
  0x6f   : > { %v281_v54 = vld [vmem:[%s2160_s6 + $0x1a8] sm:$0xff]  ;;  %v434_v15 = vcombine.high %v226_v10, %v226_v10  ;;  %v312_v16 = vld [vmem:[%s2160_s6 + $0x2a0] sm:$0x3]  ;;  %v314_v20 = vld [vmem:[%s2160_s6 + $0x2b0] sm:$0x3] }
  0x70   : > { %v253_v11 = vld [vmem:[%s2160_s6 + $0xc8] sm:$0xff]  ;;  %v284_v19 = vld [vmem:[%s2160_s6 + $0x1c0] sm:$0xff]  ;;  %v319_v31 = vld [vmem:[%s2160_s6 + $0x2d8] sm:$0x3] }
  0x71   : > { %645 = vmatpush1.xpose.msra.mxu0 %v296_v55  ;;  %v251_v55 = vld [vmem:[%s2160_s6 + $0xb8] sm:$0xff]  ;;  %v285_v12 = vld [vmem:[%s2160_s6 + $0x1c8] sm:$0xff]  ;;  %v316_v39 = vld [vmem:[%s2160_s6 + $0x2c0] sm:$0x3] }
  0x72   : > { %715 = vmatpush1.xpose.msra.mxu1 %v298_v59  ;;  %1758 = vmatprep.subr.bf16.mxu0 %v1757_v56  ;;  %v283_v56 = vld [vmem:[%s2160_s6 + $0x1b8] sm:$0xff]  ;;  %v1781_v59 = vpack.c.bf16 %v281_v54, %v249_v53  ;;  %v289_v35 = vld [vmem:[%s2160_s6 + $0x1e8] sm:$0xff] }
  0x73   : > { %1762 = vmatprep.subr.bf16.mxu1 %v1761_v60  ;;  %v248_v60 = vld [vmem:[%s2160_s6 + $0xa0] sm:$0xff]  ;;  %v323_v53 = vld [vmem:[%s2160_s6 + $0x2f8] sm:$0x3] }
  0x74   : > { %705 = vmatmul.mubr.f32.vlgmr.msra.gmra.mrb[2].mxu0 %v356_v41  ;;  %v1777_v41 = vpack.c.bf16 %v279_v34, %v247_v33  ;;  %v227_v33 = vld [vmem:[%s2174_s27 + $0x38] sm:$0xff]  ;;  %v257_v34 = vld [vmem:[%s2160_s6 + $0xe8] sm:$0xff] }
  0x75   : > { %1760 = vmatpush1.bf16.xpose.msra.mxu0 %v1759_v1  ;;  %775 = vmatmul.mubr.f32.vlgmr.msra.gmra.mrb[2].mxu1 %v363_v42  ;;  %v246_v42 = vld [vmem:[%s2160_s6 + $0x90] sm:$0xff]  ;;  %v451_v38 = vcombine.high %v227_v33, %v227_v33 }
  0x76   : > { %1764 = vmatpush1.bf16.xpose.msra.mxu1 %v1763_v2  ;;  %784 = vmatprep.subr.mxu0 %v301_v3  ;;  %v1779_v47 = vpack.c.bf16 %v278_v43, %v246_v42  ;;  %v282_v1 = vld [vmem:[%s2160_s6 + $0x1b0] sm:$0xff]  ;;  %v424_v2 = vrot.slane %v225_v52, %v2189_v21  ;;  %v431_v3 = vrot.slane %v417_v57, %v2189_v21  ;;  %v288_v42 = vld [vmem:[%s2160_s6 + $0x1e0] sm:$0xff] }
  0x77   : > { %854 = vmatprep.subr.mxu1 %v303_v5  ;;  %844 = vmatprep.mubr.f32.mxu0 %v381_v4  ;;  %v1783_v4 = vpack.c.bf16 %v280_v61, %v248_v60  ;;  %v318_v43 = vld [vmem:[%s2160_s6 + $0x2d0] sm:$0x3] }
  0x78   : > { %914 = vmatprep.mubr.f32.mxu1 %v382_v6  ;;  %v313_v6 = vld [vmem:[%s2160_s6 + $0x2a8] sm:$0x3]  ;;  %v432_v7 = vcombine.high %v424_v2, %v424_v2  ;;  %v433_v9 = vcombine.high %v431_v3, %v431_v3 }
  0x7d   : > { %785 = vmatpush1.xpose.msra.mxu0 %v300_v13  ;;  %v255_v13 = vld [vmem:[%s2160_s6 + $0xd8] sm:$0xff] }
  0x7e   : > { %855 = vmatpush1.xpose.msra.mxu1 %v302_v17  ;;  %1766 = vmatprep.subr.bf16.mxu0 %v1765_v14  ;;  %v287_v14 = vld [vmem:[%s2160_s6 + $0x1d8] sm:$0xff]  ;;  %v1789_v17 = vpack.c.bf16 %v285_v12, %v253_v11 }
  0x7f   : > { %1770 = vmatprep.subr.bf16.mxu1 %v1769_v18  ;;  %v252_v18 = vld [vmem:[%s2160_s6 + $0xc0] sm:$0xff] }
  0x80   : > { %845 = vmatmul.mubr.f32.vlgmr.msra.gmra.mrb[4].mxu0 %v373_v63  ;;  %v1785_v63 = vpack.c.bf16 %v283_v56, %v251_v55  ;;  %v322_v55 = vld [vmem:[%s2160_s6 + $0x2f0] sm:$0x3] }
  0x81   : > { %1768 = vmatpush1.bf16.xpose.msra.mxu0 %v1767_v24  ;;  %915 = vmatmul.mubr.f32.vlgmr.msra.gmra.mrb[4].mxu1 %v380_v0  ;;  %v250_v0 = vld [vmem:[%s2160_s6 + $0xb0] sm:$0xff] }
  0x82   : > { %1772 = vmatpush1.bf16.xpose.msra.mxu1 %v1771_v25  ;;  %924 = vmatprep.subr.mxu0 %v305_v26  ;;  %v1787_v5 = vpack.c.bf16 %v282_v1, %v250_v0  ;;  %v286_v24 = vld [vmem:[%s2160_s6 + $0x1d0] sm:$0xff]  ;;  %v441_v25 = vrot.slane %v226_v10, %v2189_v21  ;;  %v448_v26 = vrot.slane %v434_v15, %v2189_v21 }
  0x83   : > { %994 = vmatprep.subr.mxu1 %v307_v28  ;;  %984 = vmatprep.mubr.f32.mxu0 %v398_v27  ;;  %v1791_v27 = vpack.c.bf16 %v284_v19, %v252_v18 }
  0x84   : > { %1054 = vmatprep.mubr.f32.mxu1 %v399_v29  ;;  %v317_v29 = vld [vmem:[%s2160_s6 + $0x2c8] sm:$0x3]  ;;  %v449_v30 = vcombine.high %v441_v25, %v441_v25  ;;  %v450_v32 = vcombine.high %v448_v26, %v448_v26 }
  0x89   : > { %925 = vmatpush1.xpose.msra.mxu0 %v304_v36  ;;  %v259_v36 = vld [vmem:[%s2160_s6 + $0xf8] sm:$0xff] }
  0x8a   : > { %995 = vmatpush1.xpose.msra.mxu1 %v306_v40  ;;  %1774 = vmatprep.subr.bf16.mxu0 %v1773_v37  ;;  %v291_v37 = vld [vmem:[%s2160_s6 + $0x1f8] sm:$0xff]  ;;  %v1797_v40 = vpack.c.bf16 %v289_v35, %v257_v34 }
  0x8b   : > { %1778 = vmatprep.subr.bf16.mxu1 %v1777_v41  ;;  %v256_v41 = vld [vmem:[%s2160_s6 + $0xe0] sm:$0xff] }
  0x8c   : > { %985 = vmatmul.mubr.f32.vlgmr.msra.gmra.mrb[6].mxu0 %v390_v22  ;;  %v1793_v22 = vpack.c.bf16 %v287_v14, %v255_v13 }
  0x8d   : > { %1776 = vmatpush1.bf16.xpose.msra.mxu0 %v1775_v46  ;;  %1055 = vmatmul.mubr.f32.vlgmr.msra.gmra.mrb[6].mxu1 %v397_v23  ;;  %v254_v23 = vld [vmem:[%s2160_s6 + $0xd0] sm:$0xff] }
  0x8e   : > { %1780 = vmatpush1.bf16.xpose.msra.mxu1 %v1779_v47  ;;  %1064 = vmatprep.subr.mxu0 %v309_v48  ;;  %v1795_v28 = vpack.c.bf16 %v286_v24, %v254_v23  ;;  %v290_v46 = vld [vmem:[%s2160_s6 + $0x1f0] sm:$0xff]  ;;  %v458_v47 = vrot.slane %v227_v33, %v2189_v21  ;;  %v465_v48 = vrot.slane %v451_v38, %v2189_v21  ;;  %v320_v21 = vld [vmem:[%s2160_s6 + $0x2e0] sm:$0x3]  ;;  %v219_v38 = vld [vmem:[#allocation7] sm:$0x3] }
  0x8f   : > { %1134 = vmatprep.subr.mxu1 %v311_v50  ;;  %1124 = vmatprep.mubr.f32.mxu0 %v415_v49  ;;  %v1799_v49 = vpack.c.bf16 %v288_v42, %v256_v41 }
  0x90   : > { %1194 = vmatprep.mubr.f32.mxu1 %v416_v51  ;;  %v321_v51 = vld [vmem:[%s2160_s6 + $0x2e8] sm:$0x3]  ;;  %v466_v52 = vcombine.high %v458_v47, %v458_v47  ;;  %v467_v54 = vcombine.high %v465_v48, %v465_v48 }
  0x95   : > { %1065 = vmatpush1.xpose.msra.mxu0 %v308_v58 }
  0x96   : > { %1135 = vmatpush1.xpose.msra.mxu1 %v310_v62  ;;  %1782 = vmatprep.subr.bf16.mxu0 %v1781_v59 }
  0x97   : > { %1786 = vmatprep.subr.bf16.mxu1 %v1785_v63 }
  0x98   : > { %1125 = vmatmul.mubr.f32.vlgmr.msra.gmra.mrb[8].mxu0 %v407_v44  ;;  %v1801_v44 = vpack.c.bf16 %v291_v37, %v259_v36 }
  0x99   : > { %1784 = vmatpush1.bf16.xpose.msra.mxu0 %v1783_v4  ;;  %1195 = vmatmul.mubr.f32.vlgmr.msra.gmra.mrb[8].mxu1 %v414_v45  ;;  %v258_v45 = vld [vmem:[%s2160_s6 + $0xf0] sm:$0xff] }
  0x9a   : > { %1788 = vmatpush1.bf16.xpose.msra.mxu1 %v1787_v5  ;;  %1204 = vmatprep.subr.mxu0 %v313_v6  ;;  %v1803_v50 = vpack.c.bf16 %v290_v46, %v258_v45 }
  0x9b   : > { %1274 = vmatprep.subr.mxu1 %v315_v8  ;;  %1264 = vmatprep.mubr.f32.mxu0 %v432_v7 }
  0x9c   : > { %1334 = vmatprep.mubr.f32.mxu1 %v433_v9 }
  0xa1   : > { %1205 = vmatpush1.xpose.msra.mxu0 %v312_v16 }
  0xa2   : > { %1275 = vmatpush1.xpose.msra.mxu1 %v314_v20  ;;  %1790 = vmatprep.subr.bf16.mxu0 %v1789_v17 }
  0xa3   : > { %1794 = vmatprep.subr.bf16.mxu1 %v1793_v22 }
  0xa4   : > { %1265 = vmatmul.mubr.f32.vlgmr.msra.gmra.mrb[10].mxu0 %v424_v2 }
  0xa5   : > { %1792 = vmatpush1.bf16.xpose.msra.mxu0 %v1791_v27  ;;  %1335 = vmatmul.mubr.f32.vlgmr.msra.gmra.mrb[10].mxu1 %v431_v3 }
  0xa6   : > { %1796 = vmatpush1.bf16.xpose.msra.mxu1 %v1795_v28  ;;  %1344 = vmatprep.subr.mxu0 %v317_v29 }
  0xa7   : > { %1414 = vmatprep.subr.mxu1 %v319_v31  ;;  %1404 = vmatprep.mubr.f32.mxu0 %v449_v30 }
  0xa8   : > { %1474 = vmatprep.mubr.f32.mxu1 %v450_v32 }
  0xad   : > { %1345 = vmatpush1.xpose.msra.mxu0 %v316_v39 }
  0xae   : > { %1415 = vmatpush1.xpose.msra.mxu1 %v318_v43  ;;  %1798 = vmatprep.subr.bf16.mxu0 %v1797_v40  ;;  %v1734_v43 = vld [vmem:[#allocation5] ss:$0 sm:$0xff] (!%p1733_p4) }
  0xaf   : > { %1802 = vmatprep.subr.bf16.mxu1 %v1801_v44 }
  0xb0   : > { %1405 = vmatmul.mubr.f32.vlgmr.msra.gmra.mrb[12].mxu0 %v441_v25 }
  0xb1   : > { %1800 = vmatpush1.bf16.xpose.msra.mxu0 %v1799_v49  ;;  %1475 = vmatmul.mubr.f32.vlgmr.msra.gmra.mrb[12].mxu1 %v448_v26 }
  0xb2   : > { %1804 = vmatpush1.bf16.xpose.msra.mxu1 %v1803_v50  ;;  %1484 = vmatprep.subr.mxu0 %v321_v51 }
  0xb3   : > { %1554 = vmatprep.subr.mxu1 %v323_v53  ;;  %1544 = vmatprep.mubr.f32.mxu0 %v466_v52 }
  0xb4   : > { %1614 = vmatprep.mubr.f32.mxu1 %v467_v54 }
  0xb9   : > { %1485 = vmatpush1.xpose.msra.mxu0 %v320_v21 }
  0xba   : > { %1555 = vmatpush1.xpose.msra.mxu1 %v322_v55 }
  0xbc   : > { %1545 = vmatmul.mubr.f32.vlgmr.msra.gmra.mrb[14].mxu0 %v458_v47 }
  0xbd   : > { %1615 = vmatmul.mubr.f32.vlgmr.msra.gmra.mrb[14].mxu1 %v465_v48 }
 0x13b   : > { %v566_v56 = vpop.f32.mrb[0].mxu0 }
 0x13c   : > { %v568_v57 = vpop.f32.mrb[1].mxu0  ;;  %v636_v58 = vpop.f32.mrb[0].mxu1 }
 0x13d   : > { %v637_v59 = vadd.f32 %v636_v58, %v566_v56  ;;  %v638_v60 = vpop.f32.mrb[1].mxu1 }
 0x147   : > { %v706_v61 = vpop.f32.mrb[2].mxu0 }
 0x148   : > { %v707_v62 = vadd.f32 %v706_v61, %v637_v59  ;;  %v708_v63 = vpop.f32.mrb[3].mxu0  ;;  %v776_v0 = vpop.f32.mrb[2].mxu1 }
 0x149   : > { %v778_v1 = vpop.f32.mrb[3].mxu1 }
 0x14a   : > { %v777_v2 = vadd.f32 %v776_v0, %v707_v62 }
 0x153   : > { %v846_v3 = vpop.f32.mrb[4].mxu0 }
 0x154   : > { %v847_v4 = vadd.f32 %v846_v3, %v777_v2  ;;  %v848_v5 = vpop.f32.mrb[5].mxu0  ;;  %v916_v6 = vpop.f32.mrb[4].mxu1 }
 0x155   : > { %v918_v7 = vpop.f32.mrb[5].mxu1 }
 0x156   : > { %v917_v8 = vadd.f32 %v916_v6, %v847_v4 }
 0x15f   : > { %v986_v9 = vpop.f32.mrb[6].mxu0 }
 0x160   : > { %v987_v10 = vadd.f32 %v986_v9, %v917_v8  ;;  %v988_v11 = vpop.f32.mrb[7].mxu0  ;;  %v1056_v12 = vpop.f32.mrb[6].mxu1 }
 0x161   : > { %v1058_v13 = vpop.f32.mrb[7].mxu1 }
 0x162   : > { %v1057_v14 = vadd.f32 %v1056_v12, %v987_v10 }
 0x16b   : > { %v1126_v15 = vpop.f32.mrb[8].mxu0 }
 0x16c   : > { %v1127_v16 = vadd.f32 %v1126_v15, %v1057_v14  ;;  %v1128_v17 = vpop.f32.mrb[9].mxu0  ;;  %v1196_v18 = vpop.f32.mrb[8].mxu1 }
 0x16d   : > { %v1198_v19 = vpop.f32.mrb[9].mxu1 }
 0x16e   : > { %v1197_v20 = vadd.f32 %v1196_v18, %v1127_v16 }
 0x177   : > { %v1266_v22 = vpop.f32.mrb[10].mxu0 }
 0x178   : > { %v1267_v23 = vadd.f32 %v1266_v22, %v1197_v20  ;;  %v1268_v24 = vpop.f32.mrb[11].mxu0  ;;  %v1336_v25 = vpop.f32.mrb[10].mxu1 }
 0x179   : > { %v1338_v26 = vpop.f32.mrb[11].mxu1 }
 0x17a   : > { %v1337_v27 = vadd.f32 %v1336_v25, %v1267_v23 }
 0x183   : > { %v1406_v28 = vpop.f32.mrb[12].mxu0 }
 0x184   : > { %v1407_v29 = vadd.f32 %v1406_v28, %v1337_v27  ;;  %v1408_v30 = vpop.f32.mrb[13].mxu0  ;;  %v1476_v31 = vpop.f32.mrb[12].mxu1 }
 0x185   : > { %v1478_v32 = vpop.f32.mrb[13].mxu1 }
 0x186   : > { %v1477_v33 = vadd.f32 %v1476_v31, %v1407_v29 }
 0x18f   : > { %v1546_v34 = vpop.f32.mrb[14].mxu0 }
 0x190   : > { %v1547_v35 = vadd.f32 %v1546_v34, %v1477_v33  ;;  %v1548_v36 = vpop.f32.mrb[15].mxu0  ;;  %v1616_v37 = vpop.f32.mrb[14].mxu1  ;;  %1626 = sbr.rel (%p1733_p4) target bundleno = 443 (0x1bb), region = 48 }
 0x191   : > { %v1618_v39 = vpop.f32.mrb[15].mxu1 }
 0x192   : > { %v1617_v40 = vadd.f32 %v1616_v37, %v1547_v35 }
 0x194   : > { %v1620_v41 = vadd.f32 %v1617_v40, %v219_v38 }
 0x196   : > { %1622 = vst.msk [vmem:[#allocation7] sm:$0x3] %vm1621_vm1, %v1620_v41 }
 0x19d   : > { %v1627_v42 = vld [vmem:[#allocation7] sm:$0x3] }
 0x19e   : > { %v1635_v44 = vadd.f32 %v1734_v43, %v1627_v42 }
 0x1a0   : > { %v1735_v45 = vmul.f32 -1.442695, %v1635_v44 }
 0x1a2   : > { %1877 = vpow2.f32 %v1735_v45 }
 0x1ac   : > { %v1878_v46 = vpop.eup %1877 }
 0x1ad   : > { %v1639_v47 = vadd.f32 1.0, %v1878_v46 }
 0x1af   : > { %1879 = vrcp.f32 %v1639_v47 }
 0x1b9   : > { %v1880_v48 = vpop.eup %1879 }
 0x1ba   : > { %1642 = vst.msk [vmem:[#allocation7] sm:$0x3] %vm1621_vm1, %v1880_v48 }
 0x1bb PF: > { %p1828_p7 = scmp.eq.s32.totalorder %s2056_s16, 7  ;;  %s2016_s22 = smov [#allocation7]  }
 0x1bc   : > { %s1650_s25 = sshll.u32 %s2016_s22, 4  ;;  %s1651_s25 = int_to_ptr.vmem [resolvable:$true] %s1650_s25 }
 0x1bd   : > { %s1939_s30 = scalar_lea.vmem %s1651_s25, 32  ;;  %p1946_p10 = scmp.lt.s32.totalorder %s1651_s25, %s1651_s25 }
 0x1be   : > { %p1940_p11 = scmp.ne.s32.totalorder %s1651_s25, %s1939_s30  ;;  %p1947_p0 = scmp.lt.s32.totalorder %s1939_s30, %s1939_s30 }
 0x1c0   : > { %p1941_p12 = pnand %p1940_p11, %p1828_p7  ;;  %p1948_p1 = por %p1947_p0, %p1946_p10 }
 0x1c2   : > { %p1942_p5 = pneg %p1941_p12 }
 0x1c4   : > { %p1949_p9 = pnand %p1948_p1, %p1942_p5 }
 0x1c6   : > { %1952 = shalt.err (!%p1949_p9)
}
 0x1c7   : > { %s1953_s9 = scalar_lea.hbm %s2340_s3, 32 }
 0x1c8   : > { %p1954_p13 = scmp.ne.s32.totalorder %s2340_s3, %s1953_s9  ;;  %p1959_p3 = scmp.lt.u32.totalorder %s1953_s9, %s2340_s3 }
 0x1ca   : > { %p1955_p2 = pnand %p1954_p13, %p1828_p7 }
 0x1cc   : > { %p1956_p8 = pneg %p1955_p2 }
 0x1ce   : > { %p1961_p6 = pnand %p1959_p3, %p1956_p8 }
 0x1d0   : > { %1964 = shalt.err (!%p1961_p6)
}
 0x1d1   : > { %1814 = dma.vmem_to_hbm [thread:$0]  (%p1828_p7), %s1651_s25, 32, %s2340_s3, [#allocation4]  }
 0x1d2   : > { %1990 = dma.done.wait (%p1828_p7), [#allocation4], 32  }
 0x1d3   : > { %1992 = vsyncadd (%p1828_p7), [#allocation4], 4294967264 }
 0x1d4 PF: > { %p15_p4 = scmp.ge.s32.totalorder %s2059_s17, 10   ;;  %s2356_s12 = smov %s1999_s13 }
 0x1d5   : > { %s2357_s13 = smov %s2003_s14  ;;  %s2358_s14 = smov %s2069_s20 }
 0x1d6   : > { %s2359_s15 = smov %s2059_s17  ;;  %17 = sbr.rel (!%p15_p4) target bundleno = 5 (0x5), region = 84 }
 0x1dd   :  { %1663 = vsyncpa [#allocation3], 1 }
 0x1de   :  { %1665 = vsyncpa [#allocation3 + $0x1], 1 }
 0x1df   :  { %1666 = vsyncpa [#allocation6], 1 }
 0x1e0   :  { %1667 = vsyncpa [#allocation4], 1 }
 0x1e1   :  { %1669 = vsyncpa [#allocation4 + $0x1], 1 }

// kernel: model_forward.2
= control target key start
LH: loop header
LB: loop body
LE: loop exit
PB: predicated region body
PF: predicated region fallthrough
CT: control target
= control target key end

     0   :  { %9 = vsyncpa [#allocation5], 0  ;;  %s2786_s0 = inlined_call_operand.hbm [shape: f32[2,8,512], index: 0, kind: input, shape index: {}]   ;;  %s2787_s1 = inlined_call_operand.vmem [shape: f32[512,64], index: 1, kind: input, shape index: {}]   ;;  %s2788_s2 = inlined_call_operand.hbm [shape: f32[64,512], index: 2, kind: input, shape index: {}]   ;;  %s2789_s3 = inlined_call_operand.hbm [shape: f32[2,64], index: 3, kind: input, shape index: {}]   ;;  %s2790_s4 = inlined_call_operand.vmem [shape: f32[2,64,512], index: 4, kind: output, shape index: {}]  }
   0x1   :  { %11 = vsyncpa [#allocation5 + $0x1], 0 }
   0x2   :  { %12 = vsyncpa [#allocation7], 0  ;;  %s2016_s15 = smov 0   ;;  %s2018_s16 = smov 0  }
   0x3   :  { %s2020_s17 = smov 0   ;;  %s2022_s18 = smov 0  }
   0x4   :  { %s2024_s19 = smov 0   ;;  %s2026_s20 = smov 0  }
   0x5 LB: > { %s1526_s21 = sadd.s32 4294967295, %s1980_s20   ;;  %p52_p0 = scmp.ne.s32.totalorder %s1964_s16, %s1960_s15  ;;  %s1980_s20 = sphi %s2026_s20, %s18_s20   ;;  %s1976_s19 = sphi %s2024_s19, %s2817_s19   ;;  %s1972_s18 = sphi %s2022_s18, %s2816_s18   ;;  %s1968_s17 = sphi %s2020_s17, %s2815_s17   ;;  %s1964_s16 = sphi %s2018_s16, %s2814_s16   ;;  %s1960_s15 = sphi %s2016_s15, %s2813_s15  }
   0x6   : > { %p2046_p1 = scmp.eq.s32.totalorder %s1526_s21, 0  ;;  %p1528_p2 = scmp.ge.s32.totalorder %s1980_s20, 1 }
   0x7   : > { %p152_p3 = scmp.lt.s32.totalorder %s1980_s20, 3  ;;  %s1982_s25 = smov [#allocation6]  }
   0x8   : > { %s2798_s22 = scalar_select %p2046_p1, 1, 0 }
   0x9   : > { %p2054_p4 = por %p2046_p1, %p52_p0  ;;  %p2058_p5 = pnand %p1528_p2, %p152_p3 }
   0xa   : > { %s167_s26 = sshll.u32 %s1982_s25, 4  ;;  %s1983_s28 = smov [#allocation8]   ;;  %s168_s26 = int_to_ptr.vmem [resolvable:$true] %s167_s26 }
   0xb   : > { %s2799_s23 = scalar_select %p2054_p4, 1, 0 }
   0xc   : > { %s2800_s24 = scalar_select %p2058_p5, 1, 0 }
   0xd   : > { %p1744_p6 = pneg %p2058_p5  ;;  %s181_s29 = sshll.u32 %s1983_s28, 4  ;;  %s2070_s29 = int_to_ptr.vmem [resolvable:$true] %s181_s29 }
   0xe   : > { %s1840_s6 = scalar_lea.hbm %s2788_s2, 4096 }
   0xf   : > { %p2066_p7 = pnand %p1744_p6, %p2046_p1  ;;  %p1841_p8 = scmp.ne.s32.totalorder %s2788_s2, %s1840_s6 }
  0x10   : > { %p1847_p12 = scmp.lt.u32.totalorder %s1840_s6, %s2788_s2 }
  0x11   : > { %p1842_p9 = pneg %p2066_p7 }
  0x13   : > { %p1843_p10 = pnand %p1842_p9, %p1841_p8 }
  0x15   : > { %p1844_p11 = pneg %p1843_p10 }
  0x17   : > { %p1849_p13 = pnand %p1847_p12, %p1844_p11 }
  0x19   : > { %1852 = shalt.err (!%p1849_p13)
}
  0x1a   : > { %s1853_s11 = scalar_lea.vmem %s168_s26, 4096  ;;  %p1861_p6 = scmp.lt.s32.totalorder %s168_s26, %s168_s26 }
  0x1b   : > { %p1854_p0 = scmp.ne.s32.totalorder %s168_s26, %s1853_s11  ;;  %p1862_p1 = scmp.lt.s32.totalorder %s1853_s11, %s1853_s11 }
  0x1d   : > { %p1856_p2 = pnand %p1854_p0, %p1842_p9  ;;  %p1863_p4 = por %p1862_p1, %p1861_p6 }
  0x1f   : > { %p1857_p3 = pneg %p1856_p2 }
  0x21   : > { %p1864_p5 = pnand %p1863_p4, %p1857_p3 }
  0x23   : > { %1867 = shalt.err (!%p1864_p5)
}
  0x24   : > { %s1984_s12 = smov 512   ;;  %s1985_s13 = smov 32  }
  0x25   : > { %1747 = dma.hbm_to_vmem [thread:$0]  (!%p2066_p7), %s2788_s2, 4096, %s168_s26, [#allocation7], %s1984_s12, %s1984_s12, %s1985_s13  }
  0x26   : > { %s1868_s28 = scalar_lea.hbm %s2789_s3, 32 }
  0x27   : > { %p1869_p8 = scmp.ne.s32.totalorder %s2789_s3, %s1868_s28  ;;  %p1875_p5 = scmp.lt.u32.totalorder %s1868_s28, %s2789_s3 }
  0x29   : > { %p1871_p1 = pnand %p1869_p8, %p1842_p9 }
  0x2b   : > { %p1872_p4 = pneg %p1871_p1 }
  0x2d   : > { %p1877_p10 = pnand %p1875_p5, %p1872_p4 }
  0x2f   : > { %1880 = shalt.err (!%p1877_p10)
}
  0x30   : > { %s1881_s26 = scalar_lea.vmem %s2070_s29, 32  ;;  %p1889_p0 = scmp.lt.s32.totalorder %s2070_s29, %s2070_s29 }
  0x31   : > { %p1882_p11 = scmp.ne.s32.totalorder %s2070_s29, %s1881_s26  ;;  %p1890_p2 = scmp.lt.s32.totalorder %s1881_s26, %s1881_s26 }
  0x33   : > { %p1884_p12 = pnand %p1882_p11, %p1842_p9  ;;  %p1891_p3 = por %p1890_p2, %p1889_p0 }
  0x35   : > { %p1885_p13 = pneg %p1884_p12 }
  0x37   : > { %p1892_p6 = pnand %p1891_p3, %p1885_p13 }
  0x39   : > { %1895 = shalt.err (!%p1892_p6)
}
  0x3a   : > { %1750 = dma.hbm_to_vmem [thread:$0]  (!%p2066_p7), %s2789_s3, 32, %s2070_s29, [#allocation7]  }
  0x3b   : > { %s30_s10 = sadd.s32 1, %s1976_s19  ;;  %s39_s11 = sadd.s32 1, %s1968_s17 }
  0x3c   : > { %p32_p9 = scmp.ge.s32.totalorder %s30_s10, 2  ;;  %p46_p8 = scmp.ne.s32.totalorder %s1968_s17, %s1964_s16 }
  0x3d   : > { %p47_p1 = scmp.eq.s32.totalorder %s1980_s20, 0  ;;  %p1757_p4 = scmp.lt.s32.totalorder %s1980_s20, 2 }
  0x3e   : > { %s2819_s10 = smov (%p32_p9, %s30_s10), 0  ;;  %s192_s27 = sand.u32 1, %s1968_s17  }
  0x3f   : > { %p48_p5 = por %p47_p1, %p46_p8  ;;  %s34_s12 = ssub.s32 %s1976_s19, %s2819_s10 }
  0x40   : > { %p37_p10 = scmp.eq.s32.totalorder %s34_s12, 0  ;;  %s1532_s13 = sshll.u32 %s192_s27, 5 }
  0x41   : > { %s1569_s14 = sshll.u32 %s1976_s19, 9  ;;  %s196_s28 = scalar_lea.vmem [#allocation4], %s1532_s13 }
  0x42   : > { %s2132_s15 = scalar_select %p37_p10, %s1968_s17, %s39_s11  }
  0x43   : > { %s2137_s25 = scalar_lea.hbm %s2786_s0, %s1569_s14  ;;  %s206_s30 = sshll.u32 %s196_s28, 4  ;;  %s2139_s30 = int_to_ptr.vmem [resolvable:$true] %s206_s30 }
  0x44   : > { %p2143_p7 = pnand %p1757_p4, %p48_p5  ;;  %s193_s6 = scalar_lea.sflag [#allocation5], %s192_s27 }
  0x45   : > { %s1896_s7 = scalar_lea.hbm %s2137_s25, 512  ;;  %s1901_s9 = scalar_lea.hbm %s2786_s0, 1024 }
  0x46   : > { %p1897_p11 = scmp.ne.s32.totalorder %s2137_s25, %s1896_s7  ;;  %p1898_p12 = pneg %p2143_p7 }
  0x47   : > { %p1902_p2 = scmp.lt.u32.totalorder %s2137_s25, %s2786_s0  ;;  %p1903_p3 = scmp.lt.u32.totalorder %s1901_s9, %s1896_s7 }
  0x48   : > { %p1899_p13 = pnand %p1898_p12, %p1897_p11  ;;  %p1905_p9 = scmp.lt.u32.totalorder %s1896_s7, %s2137_s25 }
  0x49   : > { %p1904_p6 = por %p1903_p3, %p1902_p2 }
  0x4a   : > { %p1900_p0 = pneg %p1899_p13 }
  0x4b   : > { %p1906_p8 = por %p1905_p9, %p1904_p6 }
  0x4d   : > { %p1907_p1 = pnand %p1906_p8, %p1900_p0 }
  0x4f   : > { %1910 = shalt.err (!%p1907_p1)
}
  0x50   : > { %s1911_s27 = scalar_lea.vmem %s2139_s30, 512  ;;  %s1986_s13 = smov [#allocation4]  }
  0x51   : > { %p1912_p4 = scmp.ne.s32.totalorder %s2139_s30, %s1911_s27  ;;  %s1916_s14 = sshll.u32 %s1986_s13, 4  ;;  %s1917_s14 = int_to_ptr.vmem [resolvable:$false] %s1916_s14 }
  0x52   : > { %s1918_s21 = scalar_lea.vmem %s1917_s14, 1024  ;;  %p1919_p11 = scmp.lt.s32.totalorder %s2139_s30, %s1917_s14 }
  0x53   : > { %p1914_p5 = pnand %p1912_p4, %p1898_p12  ;;  %p1920_p13 = scmp.lt.s32.totalorder %s1918_s21, %s1911_s27 }
  0x55   : > { %p1915_p10 = pneg %p1914_p5  ;;  %p1921_p2 = por %p1920_p13, %p1919_p11 }
  0x57   : > { %p1922_p3 = pnand %p1921_p2, %p1915_p10 }
  0x59   : > { %1925 = shalt.err (!%p1922_p3)
}
  0x5a   : > { %1754 = dma.hbm_to_vmem [thread:$0]  (!%p2143_p7), %s2137_s25, 512, %s2139_s30, %s193_s6  }
  0x5b   : > { %p2803_p0 = scmp.ne.s32.totalorder %s2800_s24, 0 }
  0x5d   : > { %215 = sbr.rel (%p2803_p0) target bundleno = 1670 (0x686), region = 36 }
  0x64   : > { %s217_s29 = sand.u32 1, %s1964_s16   ;;  %p2804_p12 = scmp.ne.s32.totalorder %s2799_s23, 0 }
  0x65   : > { %s1536_s28 = sshll.u32 %s217_s29, 5  ;;  %s218_s7 = scalar_lea.sflag [#allocation5], %s217_s29 }
  0x66   : > { %s2175_s26 = scalar_lea.vmem [#allocation4], %s1536_s28 }
  0x67   : > { %1951 = dma.done.wait (%p2804_p12), %s218_s7, 512  }
  0x68   : > { %1953 = vsyncadd (%p2804_p12), %s218_s7, 4294966784  ;;  %p2805_p6 = scmp.ne.s32.totalorder %s2798_s22, 0 }
  0x6a   : > { %1955 = dma.done.wait (%p2805_p6), [#allocation7], 4128  }
  0x6b   : > { %1957 = vsyncadd (%p2805_p6), [#allocation7], 4294963168  ;;  %v324_v0 = vld [vmem:[%s2787_s1 + $0x80] sm:$0xff]  ;;  %v325_v1 = vld [vmem:[%s2787_s1 + $0x88] sm:$0xff]  ;;  %vm524_vm0 = vcmask 523264   ;;  %vm600_vm1 = vcmask 64512  }
  0x6c   : > { %v356_v2 = vld [vmem:[%s2787_s1 + $0x180] sm:$0xff]  ;;  %v1664_v3 = vpack.c.bf16 %v325_v1, %v324_v0  ;;  %v357_v4 = vld [vmem:[%s2787_s1 + $0x188] sm:$0xff]  ;;  %v326_v11 = vld [vmem:[%s2787_s1 + $0x90] sm:$0xff]  ;;  %vm295_vm2 = vcmask 7168   ;;  %s1990_s30 = smov 1e-24  }
  0x6d   : > { %v308_v5 = vld [vmem:[%s2787_s1] sm:$0xff]  ;;  %v309_v6 = vld [vmem:[%s2787_s1 + $0x8] sm:$0xff]  ;;  %v1696_v7 = vpack.c.bf16 %v357_v4, %v356_v2  ;;  %v327_v13 = vld [vmem:[%s2787_s1 + $0x98] sm:$0xff]  ;;  %p254_p7 = scmp.lt.s32.totalorder %s1972_s18, 1 }
  0x6e   : > { %v1666_v8 = vpack.c.bf16 %v309_v6, %v308_v5  ;;  %v340_v9 = vld [vmem:[%s2787_s1 + $0x100] sm:$0xff]  ;;  %v341_v10 = vld [vmem:[%s2787_s1 + $0x108] sm:$0xff]  ;;  %1665 = vmatprep.subr.bf16.mxu0 %v1664_v3  ;;  %v358_v14 = vld [vmem:[%s2787_s1 + $0x190] sm:$0xff]  ;;  %v1668_v16 = vpack.c.bf16 %v327_v13, %v326_v11 }
  0x6f   : > { %v1698_v12 = vpack.c.bf16 %v341_v10, %v340_v9  ;;  %v359_v15 = vld [vmem:[%s2787_s1 + $0x198] sm:$0xff]  ;;  %1697 = vmatprep.subr.bf16.mxu1 %v1696_v7  ;;  %v310_v18 = vld [vmem:[%s2787_s1 + $0x10] sm:$0xff]  ;;  %v328_v23 = vld [vmem:[%s2787_s1 + $0xa0] sm:$0xff]  ;;  %s2821_s18 = smov (!%p254_p7, %s1972_s18), 1 }
  0x70   : > { %1667 = vmatpush3.bf16.msra.mxu0 %v1666_v8  ;;  %v1700_v17 = vpack.c.bf16 %v359_v15, %v358_v14  ;;  %v311_v19 = vld [vmem:[%s2787_s1 + $0x18] sm:$0xff]  ;;  %v342_v20 = vld [vmem:[%s2787_s1 + $0x110] sm:$0xff]  ;;  %v329_v24 = vld [vmem:[%s2787_s1 + $0xa8] sm:$0xff]  ;;  %s1570_s6 = sshll.u32 %s2821_s18, 8 }
  0x71   : > { %1699 = vmatpush3.bf16.msra.mxu1 %v1698_v12  ;;  %v1670_v21 = vpack.c.bf16 %v311_v19, %v310_v18  ;;  %v343_v22 = vld [vmem:[%s2787_s1 + $0x118] sm:$0xff]  ;;  %1669 = vmatprep.subr.bf16.mxu0 %v1668_v16  ;;  %v1672_v26 = vpack.c.bf16 %v329_v24, %v328_v23  ;;  %v360_v27 = vld [vmem:[%s2787_s1 + $0x1a0] sm:$0xff]  ;;  %v361_v28 = vld [vmem:[%s2787_s1 + $0x1a8] sm:$0xff]  ;;  %s2702_s11 = scalar_lea.vmem %s2790_s4, %s1570_s6 }
  0x72   : > { %1701 = vmatprep.subr.bf16.mxu1 %v1700_v17  ;;  %v1702_v25 = vpack.c.bf16 %v343_v22, %v342_v20  ;;  %v312_v29 = vld [vmem:[%s2787_s1 + $0x20] sm:$0xff]  ;;  %v1704_v30 = vpack.c.bf16 %v361_v28, %v360_v27  ;;  %v313_v31 = vld [vmem:[%s2787_s1 + $0x28] sm:$0xff]  ;;  %v330_v35 = vld [vmem:[%s2787_s1 + $0xb0] sm:$0xff] }
  0x73   : > { %v344_v32 = vld [vmem:[%s2787_s1 + $0x120] sm:$0xff]  ;;  %v345_v33 = vld [vmem:[%s2787_s1 + $0x128] sm:$0xff]  ;;  %v1674_v34 = vpack.c.bf16 %v313_v31, %v312_v29  ;;  %v331_v36 = vld [vmem:[%s2787_s1 + $0xb8] sm:$0xff] }
  0x74   : > { %1671 = vmatpush3.bf16.msra.mxu0 %v1670_v21  ;;  %v362_v37 = vld [vmem:[%s2787_s1 + $0x1b0] sm:$0xff]  ;;  %v1706_v38 = vpack.c.bf16 %v345_v33, %v344_v32  ;;  %v1676_v39 = vpack.c.bf16 %v331_v36, %v330_v35  ;;  %v363_v40 = vld [vmem:[%s2787_s1 + $0x1b8] sm:$0xff]  ;;  %v332_v46 = vld [vmem:[%s2787_s1 + $0xc0] sm:$0xff] }
  0x75   : > { %1703 = vmatpush3.bf16.msra.mxu1 %v1702_v25  ;;  %1673 = vmatprep.subr.bf16.mxu0 %v1672_v26  ;;  %v314_v41 = vld [vmem:[%s2787_s1 + $0x30] sm:$0xff]  ;;  %v315_v42 = vld [vmem:[%s2787_s1 + $0x38] sm:$0xff]  ;;  %v1708_v43 = vpack.c.bf16 %v363_v40, %v362_v37  ;;  %v333_v47 = vld [vmem:[%s2787_s1 + $0xc8] sm:$0xff] }
  0x76   : > { %1705 = vmatprep.subr.bf16.mxu1 %v1704_v30  ;;  %v346_v44 = vld [vmem:[%s2787_s1 + $0x130] sm:$0xff]  ;;  %v347_v45 = vld [vmem:[%s2787_s1 + $0x138] sm:$0xff]  ;;  %v364_v48 = vld [vmem:[%s2787_s1 + $0x1c0] sm:$0xff]  ;;  %v1678_v50 = vpack.c.bf16 %v315_v42, %v314_v41  ;;  %v1680_v52 = vpack.c.bf16 %v333_v47, %v332_v46 }
  0x77   : > { %v365_v49 = vld [vmem:[%s2787_s1 + $0x1c8] sm:$0xff]  ;;  %v1710_v51 = vpack.c.bf16 %v347_v45, %v346_v44  ;;  %v316_v53 = vld [vmem:[%s2787_s1 + $0x40] sm:$0xff]  ;;  %v334_v58 = vld [vmem:[%s2787_s1 + $0xd0] sm:$0xff] }
  0x78   : > { %1675 = vmatpush3.bf16.msra.mxu0 %v1674_v34  ;;  %v317_v54 = vld [vmem:[%s2787_s1 + $0x48] sm:$0xff]  ;;  %v348_v55 = vld [vmem:[%s2787_s1 + $0x140] sm:$0xff]  ;;  %v1712_v56 = vpack.c.bf16 %v365_v49, %v364_v48  ;;  %v335_v59 = vld [vmem:[%s2787_s1 + $0xd8] sm:$0xff] }
  0x79   : > { %1707 = vmatpush3.bf16.msra.mxu1 %v1706_v38  ;;  %1677 = vmatprep.subr.bf16.mxu0 %v1676_v39  ;;  %v349_v57 = vld [vmem:[%s2787_s1 + $0x148] sm:$0xff]  ;;  %v366_v60 = vld [vmem:[%s2787_s1 + $0x1d0] sm:$0xff]  ;;  %v367_v61 = vld [vmem:[%s2787_s1 + $0x1d8] sm:$0xff]  ;;  %v1682_v62 = vpack.c.bf16 %v317_v54, %v316_v53  ;;  %v1684_v0 = vpack.c.bf16 %v335_v59, %v334_v58  ;;  %v1987_v53 = vmov 0.0   ;;  %v1988_v54 = vmov 1.0  }
  0x7a   : > { %1709 = vmatprep.subr.bf16.mxu1 %v1708_v43  ;;  %v1714_v63 = vpack.c.bf16 %v349_v57, %v348_v55  ;;  %v318_v1 = vld [vmem:[%s2787_s1 + $0x50] sm:$0xff]  ;;  %v319_v2 = vld [vmem:[%s2787_s1 + $0x58] sm:$0xff]  ;;  %v1716_v4 = vpack.c.bf16 %v367_v61, %v366_v60  ;;  %v336_v6 = vld [vmem:[%s2787_s1 + $0xe0] sm:$0xff]  ;;  %297 = vst.msk [vmem:[#allocation3 + $0x8] sm:$0xff] %vm295_vm2, %v1987_v53 }
  0x7b   : > { %v350_v3 = vld [vmem:[%s2787_s1 + $0x150] sm:$0xff]  ;;  %v351_v5 = vld [vmem:[%s2787_s1 + $0x158] sm:$0xff]  ;;  %v337_v7 = vld [vmem:[%s2787_s1 + $0xe8] sm:$0xff]  ;;  %v1686_v10 = vpack.c.bf16 %v319_v2, %v318_v1  ;;  %296 = vst.msk [vmem:[#allocation3] sm:$0xff] %vm295_vm2, %v1987_v53  ;;  %v1989_v2 = vmov 0  }
  0x7c   : > { %1679 = vmatpush3.bf16.msra.mxu0 %v1678_v50  ;;  %v368_v8 = vld [vmem:[%s2787_s1 + $0x1e0] sm:$0xff]  ;;  %v369_v9 = vld [vmem:[%s2787_s1 + $0x1e8] sm:$0xff]  ;;  %v1718_v13 = vpack.c.bf16 %v351_v5, %v350_v3  ;;  %v1688_v14 = vpack.c.bf16 %v337_v7, %v336_v6  ;;  %v307_v17 = vld [vmem:[%s2175_s26 + $0x18] sm:$0xff]  ;;  %298 = vst.msk [vmem:[#allocation3 + $0x10] sm:$0xff] %vm295_vm2, %v1987_v53  ;;  %1817 = vset.pattern.permute.xlu0 %v1989_v2 }
  0x7d   : > { %1711 = vmatpush3.bf16.msra.mxu1 %v1710_v51  ;;  %1681 = vmatprep.subr.bf16.mxu0 %v1680_v52  ;;  %v320_v11 = vld [vmem:[%s2787_s1 + $0x60] sm:$0xff]  ;;  %v321_v12 = vld [vmem:[%s2787_s1 + $0x68] sm:$0xff]  ;;  %v1720_v18 = vpack.c.bf16 %v369_v9, %v368_v8  ;;  %v338_v20 = vld [vmem:[%s2787_s1 + $0xf0] sm:$0xff]  ;;  %299 = vst.msk [vmem:[#allocation3 + $0x18] sm:$0xff] %vm295_vm2, %v1987_v53 }
  0x7e   : > { %1713 = vmatprep.subr.bf16.mxu1 %v1712_v56  ;;  %v352_v15 = vld [vmem:[%s2787_s1 + $0x160] sm:$0xff]  ;;  %v305_v16 = vld [vmem:[%s2175_s26 + $0x8] sm:$0xff]  ;;  %v339_v21 = vld [vmem:[%s2787_s1 + $0xf8] sm:$0xff]  ;;  %506 = vmatprep.mubr.f32.mxu1 %v307_v17  ;;  %v1690_v24 = vpack.c.bf16 %v321_v12, %v320_v11  ;;  %300 = vst.msk [vmem:[#allocation3 + $0x20] sm:$0xff] %vm295_vm2, %v1987_v53 }
  0x7f   : > { %v353_v19 = vld [vmem:[%s2787_s1 + $0x168] sm:$0xff]  ;;  %436 = vmatprep.mubr.f32.mxu0 %v305_v16  ;;  %v370_v22 = vld [vmem:[%s2787_s1 + $0x1f0] sm:$0xff]  ;;  %v371_v23 = vld [vmem:[%s2787_s1 + $0x1f8] sm:$0xff]  ;;  %v1692_v26 = vpack.c.bf16 %v339_v21, %v338_v20  ;;  %301 = vst.msk [vmem:[#allocation3 + $0x28] sm:$0xff] %vm295_vm2, %v1987_v53 }
  0x80   : > { %1683 = vmatpush3.bf16.msra.mxu0 %v1682_v62  ;;  %v1722_v25 = vpack.c.bf16 %v353_v19, %v352_v15  ;;  %v322_v27 = vld [vmem:[%s2787_s1 + $0x70] sm:$0xff]  ;;  %v323_v28 = vld [vmem:[%s2787_s1 + $0x78] sm:$0xff]  ;;  %v1724_v29 = vpack.c.bf16 %v371_v23, %v370_v22  ;;  %v304_v34 = vld [vmem:[%s2175_s26] sm:$0xff]  ;;  %302 = vst.msk [vmem:[#allocation3 + $0x30] sm:$0xff] %vm295_vm2, %v1987_v53 }
  0x81   : > { %1715 = vmatpush3.bf16.msra.mxu1 %v1714_v63  ;;  %1685 = vmatprep.subr.bf16.mxu0 %v1684_v0  ;;  %v354_v30 = vld [vmem:[%s2787_s1 + $0x170] sm:$0xff]  ;;  %v355_v31 = vld [vmem:[%s2787_s1 + $0x178] sm:$0xff]  ;;  %v1694_v32 = vpack.c.bf16 %v323_v28, %v322_v27  ;;  %v1541_v42 = vld [vmem:[#allocation8] ss:$0 sm:$0xff]  ;;  %303 = vst.msk [vmem:[#allocation3 + $0x38] sm:$0xff] %vm295_vm2, %v1987_v53 }
  0x82   : > { %1717 = vmatprep.subr.bf16.mxu1 %v1716_v4  ;;  %v1726_v33 = vpack.c.bf16 %v355_v31, %v354_v30  ;;  %v2381_v35 = vld [vmem:[%s2175_s26 + $0x10] sm:$0xff]  ;;  %v1542_v44 = vld [vmem:[#allocation8 + $0x1] ss:$0 sm:$0xff]  ;;  %v916_v15 = vld [vmem:[#allocation3 + $0x8] sm:$0xff] }
  0x84   : > { %1687 = vmatpush3.bf16.msra.mxu0 %v1686_v10  ;;  %v918_v23 = vld [vmem:[#allocation3 + $0x18] sm:$0xff] }
  0x85   : > { %1719 = vmatpush3.bf16.msra.mxu1 %v1718_v13  ;;  %1689 = vmatprep.subr.bf16.mxu0 %v1688_v14 }
  0x86   : > { %1721 = vmatprep.subr.bf16.mxu1 %v1720_v18  ;;  %v920_v31 = vld [vmem:[#allocation3 + $0x28] sm:$0xff] }
  0x88   : > { %1691 = vmatpush3.bf16.msra.mxu0 %v1690_v24  ;;  %v917_v24 = vld [vmem:[#allocation3 + $0x10] sm:$0xff] }
  0x89   : > { %1723 = vmatpush3.bf16.msra.mxu1 %v1722_v25  ;;  %1693 = vmatprep.subr.bf16.mxu0 %v1692_v26 }
  0x8a   : > { %1725 = vmatprep.subr.bf16.mxu1 %v1724_v29 }
  0x8c   : > { %1695 = vmatpush3.bf16.msra.mxu0 %v1694_v32  ;;  %v919_v32 = vld [vmem:[#allocation3 + $0x20] sm:$0xff] }
  0x8d   : > { %1727 = vmatpush3.bf16.msra.mxu1 %v1726_v33  ;;  %625 = vmatprep.subr.mxu0 %v305_v16 }
  0x8e   : > { %1728 = vmatprep.subr.mxu1 %v305_v16  ;;  %v915_v16 = vld [vmem:[#allocation3] sm:$0xff] }
  0x8f   : > { %437 = vmatmul.mubr.f32.vlgmr.msra.gmra.mrb[0].mxu0 %v304_v34 }
  0x90   : > { %507 = vmatmul.mubr.f32.vlgmr.msra.gmra.mrb[0].mxu1 %v2381_v35  ;;  %626 = vmatpush1.msra.mxu0 %v304_v34 }
  0x91   : > { %1729 = vmatpush1.msra.mxu1 %v304_v34  ;;  %689 = vmatprep.mubr.f32.mxu0 %v1987_v53 }
  0x92   : > { %738 = vmatprep.subr.mxu1 %v307_v17  ;;  %1650 = vmatprep.subr.mxu0 %v1988_v54 }
  0x93   : > { %725 = vmatprep.mubr.f32.mxu1 %v1987_v53 }
 0x162   : > { %v1603_v36 = vpop.f32.mrb[0].mxu0 }
 0x163   : > { %v1638_v37 = vpop.f32.mrb[0].mxu1  ;;  %v1604_v38 = vpop.f32.mrb[1].mxu0 }
 0x164   : > { %v1605_v39 = vadd.f32 %v1604_v38, %v1603_v36  ;;  %v1639_v40 = vpop.f32.mrb[1].mxu1 }
 0x165   : > { %v1640_v41 = vadd.f32 %v1639_v40, %v1638_v37  ;;  %v922_v40 = vld [vmem:[#allocation3 + $0x38] sm:$0xff] }
 0x167   : > { %v509_v43 = vadd.f32 %v1640_v41, %v1605_v39 }
 0x169   : > { %v517_v45 = vmul.f32 %v1541_v42, %v509_v43  ;;  %v921_v42 = vld [vmem:[#allocation3 + $0x30] sm:$0xff] }
 0x16b   : > { %v523_v46 = vadd.f32 %v1542_v44, %v517_v45 }
 0x16d   : > { %v525_v47 = vsel %vm524_vm0, %v523_v46, -inf }
 0x16e   : > { %526 = vmax.xlane.f32.xlu0 %v525_v47 }
 0x1fb   : > { %v527_v48 = vpop.xlane.xlu0 %526 }
 0x1fc   : > { %v528_v49 = vsub.f32 %v523_v46, %v527_v48 }
 0x1fe   : > { %v529_v50 = vmul.f32 1.442695, %v528_v49 }
 0x200   : > { %1818 = vpow2.f32 %v529_v50 }
 0x20a   : > { %v1819_v51 = vpop.eup %1818 }
 0x20b   : > { %v531_v52 = vsel %vm524_vm0, %v1819_v51, 0.0 }
 0x20c   : > { %532 = vadd.xlane.f32.xlu0 %v531_v52 }
 0x299   : > { %v533_v55 = vpop.xlane.xlu0 %532 }
 0x29a   : > { %1820 = vrcp.f32 %v533_v55 }
 0x2a4   : > { %v1821_v56 = vpop.eup %1820 }
 0x2a5   : > { %v535_v57 = vmul.f32 %v1821_v56, %v1819_v51 }
 0x2a7   : > { %568 = vxpose.xlu1.b32.start.end [1/1] (short) (narrow) %v535_v57, 64 }
 0x2c5   : > { %1816 = vset.pattern.permute.xlu1 %v1989_v2 }
 0x327   : > { %v584_v58 = vpop.trf.xlu1 }
 0x328   : > { %1543 = vmatmul.mubr.msk.f32.vlgmr.msra.gmra.mrb[2].mxu0 %vm600_vm1, %v584_v58 }
 0x329   : > { %1651 = vmatpush3.msra.mxu0 %v1988_v54  ;;  %695 = vmatprep.mubr.f32.mxu0 %v1987_v53 }
 0x32b   : > { %v585_v59 = vpop.trf.xlu1 }
 0x32c   : > { %1544 = vmatmul.mubr.msk.f32.gmra.mrb[4].mxu0 %vm600_vm1, %v585_v59 }
 0x32d   : > { %701 = vmatprep.mubr.f32.mxu0 %v1987_v53 }
 0x32f   : > { %v586_v60 = vpop.trf.xlu1 }
 0x330   : > { %1545 = vmatmul.mubr.msk.f32.gmra.mrb[6].mxu0 %vm600_vm1, %v586_v60 }
 0x331   : > { %707 = vmatprep.mubr.f32.mxu0 %v1987_v53 }
 0x333   : > { %v587_v61 = vpop.trf.xlu1 }
 0x334   : > { %1546 = vmatmul.mubr.msk.f32.gmra.mrb[8].mxu0 %vm600_vm1, %v587_v61 }
 0x335   : > { %713 = vmatprep.mubr.f32.mxu0 %v1987_v53 }
 0x337   : > { %v588_v62 = vpop.trf.xlu1 }
 0x338   : > { %1547 = vmatmul.mubr.msk.f32.gmra.mrb[10].mxu0 %vm600_vm1, %v588_v62 }
 0x339   : > { %719 = vmatprep.mubr.f32.mxu0 %v1987_v53 }
 0x33b   : > { %v589_v63 = vpop.trf.xlu1 }
 0x33c   : > { %1548 = vmatmul.mubr.msk.f32.gmra.mrb[12].mxu0 %vm600_vm1, %v589_v63 }
 0x33d   : > { %1652 = vmatprep.mubr.msk.f32.mxu0 %vm600_vm1, %v584_v58 }
 0x33f   : > { %v590_v0 = vpop.trf.xlu1 }
 0x340   : > { %1549 = vmatmul.mubr.msk.f32.vlgmr.msra.gmra.mrb[2].mxu1 %vm600_vm1, %v590_v0  ;;  %1653 = vmatmul.mubr.msk.f32.vlgmr.msra.gmra.mrb[14].mxu0 %vm600_vm1, %v585_v59 }
 0x341   : > { %1655 = vmatprep.mubr.msk.f32.mxu0 %vm600_vm1, %v586_v60  ;;  %731 = vmatprep.mubr.f32.mxu1 %v1987_v53 }
 0x342   : > { %739 = vmatpush1.msra.mxu1 %v2381_v35 }
 0x343   : > { %v591_v1 = vpop.trf.xlu1 }
 0x344   : > { %1550 = vmatmul.mubr.msk.f32.gmra.mrb[4].mxu1 %vm600_vm1, %v591_v1  ;;  %1656 = vmatmul.mubr.msk.f32.gmra.mrb[16].mxu0 %vm600_vm1, %v587_v61 }
 0x345   : > { %1658 = vmatprep.mubr.msk.f32.mxu0 %vm600_vm1, %v588_v62  ;;  %802 = vmatprep.mubr.f32.mxu1 %v1987_v53 }
 0x348   : > { %1551 = vmatmul.mubr.msk.f32.vlgmr.msra.gmra.mrb[6].mxu1 %vm600_vm1, %v584_v58  ;;  %1659 = vmatmul.mubr.msk.f32.gmra.mrb[18].mxu0 %vm600_vm1, %v589_v63 }
 0x349   : > { %808 = vmatprep.mubr.f32.mxu1 %v1987_v53  ;;  %1661 = vmatprep.mubr.msk.f32.mxu0 %vm600_vm1, %v590_v0 }
 0x34c   : > { %1552 = vmatmul.mubr.msk.f32.gmra.mrb[8].mxu1 %vm600_vm1, %v585_v59  ;;  %1662 = vmatmul.mubr.msk.f32.gmra.mrb[20].mxu0 %vm600_vm1, %v591_v1 }
 0x34d   : > { %814 = vmatprep.mubr.f32.mxu1 %v1987_v53 }
 0x350   : > { %1553 = vmatmul.mubr.msk.f32.gmra.mrb[10].mxu1 %vm600_vm1, %v586_v60 }
 0x351   : > { %820 = vmatprep.mubr.f32.mxu1 %v1987_v53 }
 0x354   : > { %1554 = vmatmul.mubr.msk.f32.gmra.mrb[12].mxu1 %vm600_vm1, %v587_v61 }
 0x355   : > { %826 = vmatprep.mubr.f32.mxu1 %v1987_v53 }
 0x358   : > { %1555 = vmatmul.mubr.msk.f32.gmra.mrb[14].mxu1 %vm600_vm1, %v588_v62 }
 0x359   : > { %832 = vmatprep.mubr.f32.mxu1 %v1987_v53 }
 0x35c   : > { %1556 = vmatmul.mubr.msk.f32.gmra.mrb[16].mxu1 %vm600_vm1, %v589_v63 }
 0x35d   : > { %838 = vmatprep.mubr.f32.mxu1 %v1987_v53 }
 0x360   : > { %1557 = vmatmul.mubr.msk.f32.gmra.mrb[18].mxu1 %vm600_vm1, %v590_v0 }
 0x361   : > { %844 = vmatprep.mubr.f32.mxu1 %v1987_v53 }
 0x364   : > { %1558 = vmatmul.mubr.msk.f32.gmra.mrb[20].mxu1 %vm600_vm1, %v591_v1 }
 0x3fb   : > { %v2441_v3 = vpop.f32.mrb[2].mxu0 }
 0x3fc   : > { %v2443_v4 = vpop.f32.mrb[3].mxu0 }
 0x3ff   : > { %v2445_v5 = vpop.f32.mrb[4].mxu0 }
 0x400   : > { %v2447_v6 = vpop.f32.mrb[5].mxu0 }
 0x403   : > { %v2449_v7 = vpop.f32.mrb[6].mxu0 }
 0x404   : > { %v2451_v8 = vpop.f32.mrb[7].mxu0 }
 0x407   : > { %v2453_v9 = vpop.f32.mrb[8].mxu0 }
 0x408   : > { %v2455_v10 = vpop.f32.mrb[9].mxu0 }
 0x40b   : > { %v2457_v11 = vpop.f32.mrb[10].mxu0 }
 0x40c   : > { %v2459_v12 = vpop.f32.mrb[11].mxu0 }
 0x40f   : > { %v2461_v13 = vpop.f32.mrb[12].mxu0 }
 0x410   : > { %v2463_v14 = vpop.f32.mrb[13].mxu0 }
 0x413   : > { %v1654_v17 = vpop.f32.mrb[14].mxu0  ;;  %v2465_v18 = vpop.f32.mrb[2].mxu1 }
 0x414   : > { %v1029_v19 = vadd.f32 %v1654_v17, %v916_v15  ;;  %v989_v20 = vpop.f32.mrb[15].mxu0  ;;  %v2467_v21 = vpop.f32.mrb[3].mxu1  ;;  %v1092_v15 = vld [vmem:[#allocation6 + $0x20] sm:$0xff]  ;;  %v1094_v17 = vld [vmem:[#allocation6 + $0x30] sm:$0xff] }
 0x415   : > { %v1028_v22 = vadd.f32 %v989_v20, %v915_v16  ;;  %v1093_v16 = vld [vmem:[#allocation6 + $0x28] sm:$0xff]  ;;  %v1088_v20 = vld [vmem:[#allocation6] sm:$0xff] }
 0x416   : > { %1038 = vst.msk [vmem:[#allocation3 + $0x8] sm:$0xff] %vm295_vm2, %v1029_v19  ;;  %v1095_v19 = vld [vmem:[#allocation6 + $0x38] sm:$0xff] }
 0x417   : > { %1037 = vst.msk [vmem:[#allocation3] sm:$0xff] %vm295_vm2, %v1028_v22  ;;  %v1657_v25 = vpop.f32.mrb[16].mxu0  ;;  %v2471_v26 = vpop.f32.mrb[4].mxu1  ;;  %v1089_v22 = vld [vmem:[#allocation6 + $0x8] sm:$0xff] }
 0x418   : > { %v1031_v27 = vadd.f32 %v1657_v25, %v918_v23  ;;  %v999_v28 = vpop.f32.mrb[17].mxu0  ;;  %v2473_v29 = vpop.f32.mrb[5].mxu1  ;;  %v1090_v23 = vld [vmem:[#allocation6 + $0x10] sm:$0xff] }
 0x419   : > { %v1030_v30 = vadd.f32 %v999_v28, %v917_v24  ;;  %v1091_v24 = vld [vmem:[#allocation6 + $0x18] sm:$0xff] }
 0x41a   : > { %1040 = vst.msk [vmem:[#allocation3 + $0x18] sm:$0xff] %vm295_vm2, %v1031_v27 }
 0x41b   : > { %1039 = vst.msk [vmem:[#allocation3 + $0x10] sm:$0xff] %vm295_vm2, %v1030_v30  ;;  %v2477_v33 = vpop.f32.mrb[6].mxu1  ;;  %v1660_v34 = vpop.f32.mrb[18].mxu0 }
 0x41c   : > { %v1033_v35 = vadd.f32 %v1660_v34, %v920_v31  ;;  %v2479_v36 = vpop.f32.mrb[7].mxu1  ;;  %v1009_v37 = vpop.f32.mrb[19].mxu0 }
 0x41d   : > { %v1032_v38 = vadd.f32 %v1009_v37, %v919_v32  ;;  %v1081_v39 = vld [vmem:[#allocation3 + $0x8] sm:$0xff] }
 0x41e   : > { %1042 = vst.msk [vmem:[#allocation3 + $0x28] sm:$0xff] %vm295_vm2, %v1033_v35  ;;  %1127 = vperm.xlu0 %1817, %v1081_v39   ;;  %v1080_v41 = vld [vmem:[#allocation3] sm:$0xff] }
 0x41f   : > { %1041 = vst.msk [vmem:[#allocation3 + $0x20] sm:$0xff] %vm295_vm2, %v1032_v38  ;;  %v810_v43 = vpop.f32.mrb[8].mxu1  ;;  %v1663_v44 = vpop.f32.mrb[20].mxu0  ;;  %1122 = vperm.xlu1 %1816, %v1080_v41   ;;  %v1100_v39 = vld [vmem:[#allocation6 + $0x60] sm:$0xff] }
 0x420   : > { %v1035_v45 = vadd.f32 %v1663_v44, %v922_v40  ;;  %v812_v46 = vpop.f32.mrb[9].mxu1  ;;  %v1019_v47 = vpop.f32.mrb[21].mxu0  ;;  %v1101_v40 = vld [vmem:[#allocation6 + $0x68] sm:$0xff]  ;;  %v1102_v44 = vld [vmem:[#allocation6 + $0x70] sm:$0xff] }
 0x421   : > { %v1083_v48 = vld [vmem:[#allocation3 + $0x18] sm:$0xff]  ;;  %v1034_v49 = vadd.f32 %v1019_v47, %v921_v42 }
 0x422   : > { %1044 = vst.msk [vmem:[#allocation3 + $0x38] sm:$0xff] %vm295_vm2, %v1035_v45  ;;  %1137 = vperm.xlu0 %1817, %v1083_v48   ;;  %v1082_v52 = vld [vmem:[#allocation3 + $0x10] sm:$0xff]  ;;  %v1103_v45 = vld [vmem:[#allocation6 + $0x78] sm:$0xff] }
 0x423   : > { %v2484_v50 = vpop.f32.mrb[10].mxu1  ;;  %1043 = vst.msk [vmem:[#allocation3 + $0x30] sm:$0xff] %vm295_vm2, %v1034_v49 }
 0x424   : > { %v2487_v51 = vpop.f32.mrb[11].mxu1 }
 0x425   : > { %v1085_v53 = vld [vmem:[#allocation3 + $0x28] sm:$0xff] }
 0x426   : > { %1132 = vperm.xlu0 %1817, %v1082_v52   ;;  %1147 = vperm.xlu1 %1816, %v1085_v53   ;;  %v1084_v56 = vld [vmem:[#allocation3 + $0x20] sm:$0xff] }
 0x427   : > { %v2489_v54 = vpop.f32.mrb[12].mxu1 }
 0x428   : > { %v2491_v55 = vpop.f32.mrb[13].mxu1 }
 0x429   : > { %v1087_v57 = vld [vmem:[#allocation3 + $0x38] sm:$0xff] }
 0x42a   : > { %1142 = vperm.xlu0 %1817, %v1084_v56   ;;  %1157 = vperm.xlu1 %1816, %v1087_v57   ;;  %v1086_v59 = vld [vmem:[#allocation3 + $0x30] sm:$0xff] }
 0x42b   : > { %v2493_v58 = vpop.f32.mrb[14].mxu1 }
 0x42c   : > { %v2495_v60 = vpop.f32.mrb[15].mxu1 }
 0x42e   : > { %1152 = vperm.xlu0 %1817, %v1086_v59  }
 0x42f   : > { %v2497_v61 = vpop.f32.mrb[16].mxu1 }
 0x430   : > { %v2499_v62 = vpop.f32.mrb[17].mxu1 }
 0x433   : > { %v2501_v63 = vpop.f32.mrb[18].mxu1 }
 0x434   : > { %v2503_v0 = vpop.f32.mrb[19].mxu1 }
 0x437   : > { %v2505_v1 = vpop.f32.mrb[20].mxu1 }
 0x438   : > { %v2507_v2 = vpop.f32.mrb[21].mxu1 }
 0x49d   : > { %v1128_v25 = vpop.permute.xlu0 %1127 }
 0x49e   : > { %v1164_v27 = vmul.f32 %v1128_v25, %v1092_v15  ;;  %v1165_v28 = vmul.f32 %v1128_v25, %v1093_v16  ;;  %v1166_v30 = vmul.f32 %v1128_v25, %v1094_v17  ;;  %v1167_v31 = vmul.f32 %v1128_v25, %v1095_v19  ;;  %v1123_v32 = vpop.permute.xlu1 %1122  ;;  %v1098_v16 = vld [vmem:[#allocation6 + $0x50] sm:$0xff]  ;;  %v1109_v19 = vld [vmem:[#allocation6 + $0xa8] sm:$0xff] }
 0x49f   : > { %v1160_v34 = vmul.f32 %v1123_v32, %v1088_v20  ;;  %v1161_v35 = vmul.f32 %v1123_v32, %v1089_v22  ;;  %v1162_v37 = vmul.f32 %v1123_v32, %v1090_v23  ;;  %v1163_v38 = vmul.f32 %v1123_v32, %v1091_v24 }
 0x4a0   : > { %v2510_v41 = vsub.f32 %v2445_v5, %v1164_v27  ;;  %v2513_v42 = vsub.f32 %v2447_v6, %v1165_v28  ;;  %v2515_v47 = vsub.f32 %v810_v43, %v1166_v30  ;;  %v2517_v48 = vsub.f32 %v812_v46, %v1167_v31  ;;  %v1096_v6 = vld [vmem:[#allocation6 + $0x40] sm:$0xff]  ;;  %v1097_v46 = vld [vmem:[#allocation6 + $0x48] sm:$0xff]  ;;  %v1110_v28 = vld [vmem:[#allocation6 + $0xb0] sm:$0xff] }
 0x4a1   : > { %v2520_v49 = vsub.f32 %v2441_v3, %v1160_v34  ;;  %v2523_v52 = vsub.f32 %v2443_v4, %v1161_v35  ;;  %v1138_v53 = vpop.permute.xlu0 %1137  ;;  %v2526_v56 = vsub.f32 %v2477_v33, %v1162_v37  ;;  %v2529_v59 = vsub.f32 %v2479_v36, %v1163_v38  ;;  %v1099_v3 = vld [vmem:[#allocation6 + $0x58] sm:$0xff]  ;;  %v1108_v33 = vld [vmem:[#allocation6 + $0xa0] sm:$0xff] }
 0x4a2   : > { %2806 = vst [vmem:[#allocation11_spill] sm:$0xff] %v2513_v42  ;;  %2807 = vst [vmem:[#allocation12_spill] sm:$0xff] %v2515_v47  ;;  %v1172_v5 = vmul.f32 %v1138_v53, %v1100_v39  ;;  %v1173_v57 = vmul.f32 %v1138_v53, %v1101_v40  ;;  %v1174_v43 = vmul.f32 %v1138_v53, %v1102_v44  ;;  %v1111_v30 = vld [vmem:[#allocation6 + $0xb8] sm:$0xff] }
 0x4a3   : > { %2808 = vst [vmem:[#allocation13_spill] sm:$0xff] %v2517_v48  ;;  %v2531_v15 = vmul.f32 %v1138_v53, %v1103_v45  ;;  %v1228_v4 = vmul.f32 %v2510_v41, %v2510_v41  ;;  %v1229_v17 = vmul.f32 %v2513_v42, %v2513_v42  ;;  %v1230_v20 = vmul.f32 %v2515_v47, %v2515_v47  ;;  %v1104_v45 = vld [vmem:[#allocation6 + $0x80] sm:$0xff]  ;;  %v1106_v53 = vld [vmem:[#allocation6 + $0x90] sm:$0xff] }
 0x4a4   : > { %v1231_v36 = vmul.f32 %v2517_v48, %v2517_v48  ;;  %v1224_v22 = vmul.f32 %v2520_v49, %v2520_v49  ;;  %v1225_v23 = vmul.f32 %v2523_v52, %v2523_v52  ;;  %v2546_v24 = vsub.f32 %v2453_v9, %v1172_v5  ;;  %v1105_v9 = vld [vmem:[#allocation6 + $0x88] sm:$0xff]  ;;  %v1114_v42 = vld [vmem:[#allocation6 + $0xd0] sm:$0xff] }
 0x4a5   : > { %v2549_v25 = vsub.f32 %v2455_v10, %v1173_v57  ;;  %v1133_v27 = vpop.permute.xlu0 %1132  ;;  %v1148_v31 = vpop.permute.xlu1 %1147  ;;  %v1261_v32 = vadd.f32 %v1229_v17, %v1228_v4  ;;  %v1226_v34 = vmul.f32 %v2526_v56, %v2526_v56  ;;  %v1227_v10 = vmul.f32 %v2529_v59, %v2529_v59  ;;  %v1107_v17 = vld [vmem:[#allocation6 + $0x98] sm:$0xff] }
 0x4a6   : > { %v1168_v35 = vmul.f32 %v1133_v27, %v1096_v6  ;;  %v1169_v37 = vmul.f32 %v1133_v27, %v1097_v46  ;;  %v1170_v38 = vmul.f32 %v1133_v27, %v1098_v16  ;;  %v1171_v39 = vmul.f32 %v1133_v27, %v1099_v3  ;;  %v1116_v6 = vld [vmem:[#allocation6 + $0xe0] sm:$0xff]  ;;  %v1117_v46 = vld [vmem:[#allocation6 + $0xe8] sm:$0xff] }
 0x4a7   : > { %v1180_v40 = vmul.f32 %v1148_v31, %v1108_v33  ;;  %v1181_v44 = vmul.f32 %v1148_v31, %v1109_v19  ;;  %v2556_v5 = vsub.f32 %v2489_v54, %v1174_v43  ;;  %v2558_v57 = vmul.f32 %v1148_v31, %v1110_v28  ;;  %v1118_v28 = vld [vmem:[#allocation6 + $0xf0] sm:$0xff] }
 0x4a8   : > { %v2560_v4 = vmul.f32 %v1148_v31, %v1111_v30  ;;  %v1262_v16 = vadd.f32 %v1261_v32, %v1230_v20  ;;  %v1256_v3 = vadd.f32 %v1225_v23, %v1224_v22  ;;  %v2563_v33 = vsub.f32 %v2449_v7, %v1168_v35  ;;  %v1119_v30 = vld [vmem:[#allocation6 + $0xf8] sm:$0xff]  ;;  %v1112_v32 = vld [vmem:[#allocation6 + $0xc0] sm:$0xff]  ;;  %v1113_v35 = vld [vmem:[#allocation6 + $0xc8] sm:$0xff] }
 0x4a9   : > { %v2566_v19 = vsub.f32 %v2451_v8, %v1169_v37  ;;  %v2569_v27 = vsub.f32 %v2461_v13, %v1180_v40  ;;  %v2572_v54 = vsub.f32 %v2463_v14, %v1181_v44  ;;  %v1143_v43 = vpop.permute.xlu0 %1142  ;;  %v1158_v31 = vpop.permute.xlu1 %1157  ;;  %v2575_v20 = vsub.f32 %v2484_v50, %v1170_v38 }
 0x4aa   : > { %v1176_v48 = vmul.f32 %v1143_v43, %v1104_v45  ;;  %v1177_v47 = vmul.f32 %v1143_v43, %v1105_v9  ;;  %v2578_v7 = vsub.f32 %v2487_v51, %v1171_v39  ;;  %v1178_v8 = vmul.f32 %v1143_v43, %v1106_v53  ;;  %v1115_v45 = vld [vmem:[#allocation6 + $0xd8] sm:$0xff] }
 0x4ab   : > { %v1179_v22 = vmul.f32 %v1143_v43, %v1107_v17  ;;  %v1188_v23 = vmul.f32 %v1158_v31, %v1116_v6  ;;  %v1189_v13 = vmul.f32 %v1158_v31, %v1117_v46  ;;  %v1190_v14 = vmul.f32 %v1158_v31, %v1118_v28 }
 0x4ac   : > { %v2580_v37 = vmul.f32 %v1158_v31, %v1119_v30  ;;  %v1263_v40 = vadd.f32 %v1262_v16, %v1231_v36  ;;  %v1257_v44 = vadd.f32 %v1256_v3, %v1226_v34  ;;  %v2583_v9 = vsub.f32 %v2457_v11, %v1176_v48 }
 0x4ad   : > { %v2586_v50 = vsub.f32 %v2459_v12, %v1177_v47  ;;  %v1153_v51 = vpop.permute.xlu0 %1152  ;;  %v1232_v38 = vmul.f32 %v2563_v33, %v2563_v33  ;;  %v1233_v39 = vmul.f32 %v2566_v19, %v2566_v19  ;;  %v2593_v53 = vsub.f32 %v2471_v26, %v1188_v23 }
 0x4ae   : > { %1264 = vadd.xlane.f32.xlu1 %v1263_v40  ;;  %v1258_v36 = vadd.f32 %v1257_v44, %v1227_v10  ;;  %v1184_v34 = vmul.f32 %v1153_v51, %v1112_v32  ;;  %v1185_v17 = vmul.f32 %v1153_v51, %v1113_v35  ;;  %v1186_v6 = vmul.f32 %v1153_v51, %v1114_v42 }
 0x4af   : > { %v1187_v11 = vmul.f32 %v1153_v51, %v1115_v45  ;;  %v1234_v12 = vmul.f32 %v2575_v20, %v2575_v20  ;;  %v1266_v47 = vadd.f32 %v1233_v39, %v1232_v38  ;;  %v1235_v26 = vmul.f32 %v2578_v7, %v2578_v7 }
 0x4b0   : > { %1259 = vadd.xlane.f32.xlu0 %v1258_v36  ;;  %v2598_v48 = vsub.f32 %v2465_v18, %v1184_v34  ;;  %v2601_v46 = vsub.f32 %v2467_v21, %v1185_v17  ;;  %v2606_v10 = vsub.f32 %v2493_v58, %v1178_v8  ;;  %v2609_v42 = vsub.f32 %v2495_v60, %v1179_v22 }
 0x4b1   : > { %v1267_v16 = vadd.f32 %v1266_v47, %v1234_v12  ;;  %v1240_v3 = vmul.f32 %v2583_v9, %v2583_v9  ;;  %v1241_v18 = vmul.f32 %v2586_v50, %v2586_v50  ;;  %v2616_v43 = vsub.f32 %v2473_v29, %v1189_v13 }
 0x4b2   : > { %v2620_v21 = vsub.f32 %v2491_v55, %v2531_v15  ;;  %v1236_v58 = vmul.f32 %v2546_v24, %v2546_v24  ;;  %v1237_v60 = vmul.f32 %v2549_v25, %v2549_v25  ;;  %v1242_v30 = vmul.f32 %v2606_v10, %v2606_v10 }
 0x4b3   : > { %v1268_v28 = vadd.f32 %v1267_v16, %v1235_v26  ;;  %v1276_v31 = vadd.f32 %v1241_v18, %v1240_v3  ;;  %v1238_v8 = vmul.f32 %v2556_v5, %v2556_v5  ;;  %v2631_v22 = vsub.f32 %v2501_v63, %v1186_v6 }
 0x4b4   : > { %v1271_v29 = vadd.f32 %v1237_v60, %v1236_v58  ;;  %v2634_v55 = vsub.f32 %v2503_v0, %v1187_v11  ;;  %v1248_v15 = vmul.f32 %v2598_v48, %v2598_v48  ;;  %v1243_v23 = vmul.f32 %v2609_v42, %v2609_v42 }
 0x4b5   : > { %1269 = vadd.xlane.f32.xlu0 %v1268_v28  ;;  %v1277_v13 = vadd.f32 %v1276_v31, %v1242_v30  ;;  %v1249_v32 = vmul.f32 %v2601_v46, %v2601_v46  ;;  %v2644_v35 = vsub.f32 %v2497_v61, %v2558_v57  ;;  %v1239_v63 = vmul.f32 %v2620_v21, %v2620_v21 }
 0x4b6   : > { %v1272_v0 = vadd.f32 %v1271_v29, %v1238_v8  ;;  %v2650_v40 = vsub.f32 %v2499_v62, %v2560_v4  ;;  %v1244_v44 = vmul.f32 %v2569_v27, %v2569_v27  ;;  %v1250_v51 = vmul.f32 %v2631_v22, %v2631_v22 }
 0x4b7   : > { %v1278_v45 = vadd.f32 %v1277_v13, %v1243_v23  ;;  %v1286_v38 = vadd.f32 %v1249_v32, %v1248_v15  ;;  %v1245_v61 = vmul.f32 %v2572_v54, %v2572_v54  ;;  %v1251_v39 = vmul.f32 %v2634_v55, %v2634_v55 }
 0x4b8   : > { %v1273_v57 = vadd.f32 %v1272_v0, %v1239_v63  ;;  %v1246_v36 = vmul.f32 %v2644_v35, %v2644_v35  ;;  %v2663_v62 = vsub.f32 %v2505_v1, %v1190_v14  ;;  %v1252_v17 = vmul.f32 %v2593_v53, %v2593_v53 }
 0x4b9   : > { %1279 = vadd.xlane.f32.xlu1 %v1278_v45  ;;  %v1287_v4 = vadd.f32 %v1286_v38, %v1250_v51  ;;  %v1281_v34 = vadd.f32 %v1245_v61, %v1244_v44  ;;  %v1253_v6 = vmul.f32 %v2616_v43, %v2616_v43  ;;  %v1247_v11 = vmul.f32 %v2650_v40, %v2650_v40 }
 0x4ba   : > { %1274 = vadd.xlane.f32.xlu0 %v1273_v57  ;;  %v2673_v12 = vsub.f32 %v2507_v2, %v2580_v37  ;;  %v1254_v14 = vmul.f32 %v2663_v62, %v2663_v62 }
 0x4bb   : > { %v1288_v47 = vadd.f32 %v1287_v4, %v1251_v39  ;;  %v1282_v1 = vadd.f32 %v1281_v34, %v1246_v36  ;;  %v1291_v26 = vadd.f32 %v1253_v6, %v1252_v17 }
 0x4bc   : > { %v1255_v18 = vmul.f32 %v2673_v12, %v2673_v12 }
 0x4bd   : > { %1289 = vadd.xlane.f32.xlu1 %v1288_v47  ;;  %v1283_v16 = vadd.f32 %v1282_v1, %v1247_v11  ;;  %v1292_v3 = vadd.f32 %v1291_v26, %v1254_v14 }
 0x4bf   : > { %1284 = vadd.xlane.f32.xlu0 %v1283_v16  ;;  %v1293_v58 = vadd.f32 %v1292_v3, %v1255_v18 }
 0x4c3   : > { %1294 = vadd.xlane.f32.xlu0 %v1293_v58 }
 0x53b   : > { %v1265_v60 = vpop.xlane.xlu1 %1264 }
 0x53c   : > { %v1297_v28 = vmax.f32 %v1265_v60, 1e-24 }
 0x53d   : > { %v1260_v30 = vpop.xlane.xlu0 %1259 }
 0x53e   : > { %1822 = vrsqrt.f32 %v1297_v28  ;;  %v1296_v2 = vmax.f32 %v1260_v30, 1e-24 }
 0x540   : > { %1824 = vrsqrt.f32 %v1296_v2 }
 0x542   : > { %v1270_v37 = vpop.xlane.xlu0 %1269 }
 0x543   : > { %v1298_v31 = vmax.f32 %v1270_v37, 1e-24 }
 0x545   : > { %1826 = vrsqrt.f32 %v1298_v31 }
 0x546   : > { %v1280_v8 = vpop.xlane.xlu1 %1279 }
 0x547   : > { %v1275_v29 = vpop.xlane.xlu0 %1274  ;;  %v1300_v15 = vmax.f32 %v1280_v8, 1e-24 }
 0x548   : > { %v2679_v23 = vpop.eup %1822  ;;  %v1299_v13 = vmax.f32 %v1275_v29, 1e-24 }
 0x549   : > { %1828 = vrsqrt.f32 %v1300_v15  ;;  %v1313_v0 = vmul.f32 %v2679_v23, %v2679_v23 }
 0x54a   : > { %v2681_v32 = vpop.eup %1824  ;;  %1830 = vrsqrt.f32 %v1299_v13  ;;  %v1290_v63 = vpop.xlane.xlu1 %1289 }
 0x54b   : > { %v1312_v44 = vmul.f32 %v2681_v32, %v2681_v32  ;;  %v1302_v45 = vmax.f32 %v1290_v63, 1e-24  ;;  %v1321_v57 = vmul.f32 %v1313_v0, %v1265_v60 }
 0x54c   : > { %v1285_v51 = vpop.xlane.xlu0 %1284 }
 0x54d   : > { %v1301_v38 = vmax.f32 %v1285_v51, 1e-24  ;;  %1832 = vrsqrt.f32 %v1302_v45  ;;  %v1320_v39 = vmul.f32 %v1312_v44, %v1260_v30  ;;  %v1329_v11 = vsel %vm295_vm2, %v1321_v57, 0.0 }
 0x54f   : > { %v1827_v61 = vpop.eup %1826  ;;  %1834 = vrsqrt.f32 %v1301_v38  ;;  %v1328_v47 = vsel %vm295_vm2, %v1320_v39, 0.0 }
 0x550   : > { %v1314_v36 = vmul.f32 %v1827_v61, %v1827_v61  ;;  %v1295_v4 = vpop.xlane.xlu0 %1294  ;;  %v1330_v3 = vadd.f32 %v1329_v11, %v1328_v47 }
 0x551   : > { %v1303_v34 = vmax.f32 %v1295_v4, 1e-24 }
 0x552   : > { %v1322_v17 = vmul.f32 %v1314_v36, %v1270_v37 }
 0x553   : > { %v1829_v6 = vpop.eup %1828  ;;  %1836 = vrsqrt.f32 %v1303_v34 }
 0x554   : > { %v1831_v1 = vpop.eup %1830  ;;  %v1316_v14 = vmul.f32 %v1829_v6, %v1829_v6  ;;  %v1331_v26 = vsel %vm295_vm2, %v1322_v17, 0.0 }
 0x555   : > { %v1315_v16 = vmul.f32 %v1831_v1, %v1831_v1  ;;  %v1332_v28 = vadd.f32 %v1331_v26, %v1330_v3 }
 0x556   : > { %v1324_v60 = vmul.f32 %v1316_v14, %v1280_v8 }
 0x557   : > { %v1833_v18 = vpop.eup %1832  ;;  %v1323_v58 = vmul.f32 %v1315_v16, %v1275_v29 }
 0x558   : > { %v1318_v30 = vmul.f32 %v1833_v18, %v1833_v18  ;;  %v1335_v13 = vsel %vm295_vm2, %v1324_v60, 0.0 }
 0x559   : > { %v1835_v2 = vpop.eup %1834  ;;  %v1333_v37 = vsel %vm295_vm2, %v1323_v58, 0.0 }
 0x55a   : > { %v1334_v31 = vadd.f32 %v1333_v37, %v1332_v28  ;;  %v1317_v15 = vmul.f32 %v1835_v2, %v1835_v2  ;;  %v1326_v45 = vmul.f32 %v1318_v30, %v1290_v63 }
 0x55c   : > { %v1336_v0 = vadd.f32 %v1335_v13, %v1334_v31  ;;  %v1325_v44 = vmul.f32 %v1317_v15, %v1285_v51  ;;  %v1339_v29 = vsel %vm295_vm2, %v1326_v45, 0.0 }
 0x55d   : > { %v1837_v38 = vpop.eup %1836 }
 0x55e   : > { %v1337_v57 = vsel %vm295_vm2, %v1325_v44, 0.0  ;;  %v1319_v39 = vmul.f32 %v1837_v38, %v1837_v38 }
 0x55f   : > { %v1338_v36 = vadd.f32 %v1337_v57, %v1336_v0  ;;  %v2809_v57 = vld [vmem:[#allocation11_spill] sm:$0xff] }
 0x560   : > { %v1327_v8 = vmul.f32 %v1319_v39, %v1295_v4  ;;  %v2810_v39 = vld [vmem:[#allocation12_spill] sm:$0xff] }
 0x561   : > { %v1340_v34 = vadd.f32 %v1339_v29, %v1338_v36 }
 0x562   : > { %v1341_v17 = vsel %vm295_vm2, %v1327_v8, 0.0 }
 0x563   : > { %v1342_v11 = vadd.f32 %v1341_v17, %v1340_v34 }
 0x565   : > { %1343 = vadd.xlane.f32.xlu1 %v1342_v11 }
 0x5f2   : > { %v1344_v47 = vpop.xlane.xlu1 %1343 }
 0x5f3   : > { %v1345_v14 = vrot.slane %v1344_v47, 4 }
 0x5f5   : > { %v1346_v26 = vadd.f32 %v1345_v14, %v1344_v47 }
 0x5f7   : > { %v1347_v51 = vrot.slane %v1346_v26, 2 }
 0x5f9   : > { %v1348_v63 = vadd.f32 %v1347_v51, %v1346_v26 }
 0x5fb   : > { %v1349_v16 = vrot.slane %v1348_v63, 1 }
 0x5fd   : > { %v1350_v3 = vadd.f32 %v1349_v16, %v1348_v63 }
 0x5ff   : > { %1730 = vpush %v1350_v3 }
 0x630   : > { %s1731_s26 = spop %1730 }
 0x631   : > { %s1352_s5 = smax.f32 %s1990_s30, %s1731_s26 }
 0x632   : > { %v1353_v58 = vstv %s1352_s5 }
 0x633   : > { %1838 = vrsqrt.f32 %v1353_v58 }
 0x63d   : > { %v1839_v4 = vpop.eup %1838 }
 0x63e   : > { %1732 = vpush %v1839_v4 }
 0x66f   : > { %s1733_s8 = spop %1732 }
 0x670   : > { %v1356_v60 = vstv %s1733_s8 }
 0x671   : > { %v1357_v28 = vmul.f32 %v2681_v32, %v1356_v60  ;;  %v1358_v30 = vmul.f32 %v2679_v23, %v1356_v60  ;;  %v1359_v37 = vmul.f32 %v1827_v61, %v1356_v60  ;;  %v1360_v31 = vmul.f32 %v1831_v1, %v1356_v60 }
 0x672   : > { %v1361_v15 = vmul.f32 %v1829_v6, %v1356_v60  ;;  %v1362_v13 = vmul.f32 %v1835_v2, %v1356_v60  ;;  %v1363_v0 = vmul.f32 %v1833_v18, %v1356_v60  ;;  %v1364_v44 = vmul.f32 %v1837_v38, %v1356_v60  ;;  %v2811_v18 = vld [vmem:[#allocation13_spill] sm:$0xff] }
 0x673   : > { %v1365_v45 = vmul.f32 %v1357_v28, %v2520_v49  ;;  %v1366_v32 = vmul.f32 %v1357_v28, %v2523_v52  ;;  %v1367_v23 = vmul.f32 %v1357_v28, %v2526_v56  ;;  %v1368_v61 = vmul.f32 %v1357_v28, %v2529_v59 }
 0x674   : > { %v1369_v1 = vmul.f32 %v1358_v30, %v2510_v41  ;;  %v1370_v6 = vmul.f32 %v1358_v30, %v2809_v57  ;;  %v1371_v2 = vmul.f32 %v1358_v30, %v2810_v39  ;;  %v1372_v38 = vmul.f32 %v1358_v30, %v2811_v18 }
 0x675   : > { %v1373_v49 = vmul.f32 %v1359_v37, %v2563_v33  ;;  %v1374_v52 = vmul.f32 %v1359_v37, %v2566_v19  ;;  %v1375_v56 = vmul.f32 %v1359_v37, %v2575_v20  ;;  %v1376_v59 = vmul.f32 %v1359_v37, %v2578_v7  ;;  %1397 = vst [vmem:[%s2702_s11] sm:$0xff] %v1365_v45 }
 0x676   : > { %1398 = vst [vmem:[%s2702_s11 + $0x8] sm:$0xff] %v1366_v32  ;;  %1399 = vst [vmem:[%s2702_s11 + $0x10] sm:$0xff] %v1367_v23  ;;  %v1377_v41 = vmul.f32 %v1360_v31, %v2546_v24  ;;  %v1378_v36 = vmul.f32 %v1360_v31, %v2549_v25  ;;  %v1379_v33 = vmul.f32 %v1360_v31, %v2556_v5 }
 0x677   : > { %1400 = vst [vmem:[%s2702_s11 + $0x18] sm:$0xff] %v1368_v61  ;;  %v1380_v19 = vmul.f32 %v1360_v31, %v2620_v21  ;;  %1401 = vst [vmem:[%s2702_s11 + $0x20] sm:$0xff] %v1369_v1  ;;  %v1381_v20 = vmul.f32 %v1361_v15, %v2583_v9  ;;  %v1382_v7 = vmul.f32 %v1361_v15, %v2586_v50 }
 0x678   : > { %1402 = vst [vmem:[%s2702_s11 + $0x28] sm:$0xff] %v1370_v6  ;;  %1403 = vst [vmem:[%s2702_s11 + $0x30] sm:$0xff] %v1371_v2  ;;  %v1383_v24 = vmul.f32 %v1361_v15, %v2606_v10  ;;  %v1384_v25 = vmul.f32 %v1361_v15, %v2609_v42  ;;  %v1385_v5 = vmul.f32 %v1362_v13, %v2569_v27 }
 0x679   : > { %1404 = vst [vmem:[%s2702_s11 + $0x38] sm:$0xff] %v1372_v38  ;;  %1405 = vst [vmem:[%s2702_s11 + $0x40] sm:$0xff] %v1373_v49  ;;  %v1386_v21 = vmul.f32 %v1362_v13, %v2572_v54  ;;  %v1387_v9 = vmul.f32 %v1362_v13, %v2644_v35  ;;  %v1388_v50 = vmul.f32 %v1362_v13, %v2650_v40 }
 0x67a   : > { %1406 = vst [vmem:[%s2702_s11 + $0x48] sm:$0xff] %v1374_v52  ;;  %1407 = vst [vmem:[%s2702_s11 + $0x50] sm:$0xff] %v1375_v56  ;;  %v1389_v10 = vmul.f32 %v1363_v0, %v2598_v48  ;;  %v1390_v42 = vmul.f32 %v1363_v0, %v2601_v46  ;;  %v1391_v27 = vmul.f32 %v1363_v0, %v2631_v22 }
 0x67b   : > { %1408 = vst [vmem:[%s2702_s11 + $0x58] sm:$0xff] %v1376_v59  ;;  %1409 = vst [vmem:[%s2702_s11 + $0x60] sm:$0xff] %v1377_v41  ;;  %v1392_v54 = vmul.f32 %v1363_v0, %v2634_v55  ;;  %v1393_v48 = vmul.f32 %v1364_v44, %v2593_v53  ;;  %v1394_v35 = vmul.f32 %v1364_v44, %v2616_v43 }
 0x67c   : > { %1410 = vst [vmem:[%s2702_s11 + $0x68] sm:$0xff] %v1378_v36  ;;  %1411 = vst [vmem:[%s2702_s11 + $0x70] sm:$0xff] %v1379_v33  ;;  %v1395_v46 = vmul.f32 %v1364_v44, %v2663_v62  ;;  %v1396_v22 = vmul.f32 %v1364_v44, %v2673_v12 }
 0x67d   : > { %1412 = vst [vmem:[%s2702_s11 + $0x78] sm:$0xff] %v1380_v19  ;;  %1413 = vst [vmem:[%s2702_s11 + $0x80] sm:$0xff] %v1381_v20 }
 0x67e   : > { %1414 = vst [vmem:[%s2702_s11 + $0x88] sm:$0xff] %v1382_v7  ;;  %1415 = vst [vmem:[%s2702_s11 + $0x90] sm:$0xff] %v1383_v24 }
 0x67f   : > { %1416 = vst [vmem:[%s2702_s11 + $0x98] sm:$0xff] %v1384_v25  ;;  %1417 = vst [vmem:[%s2702_s11 + $0xa0] sm:$0xff] %v1385_v5 }
 0x680   : > { %1418 = vst [vmem:[%s2702_s11 + $0xa8] sm:$0xff] %v1386_v21  ;;  %1419 = vst [vmem:[%s2702_s11 + $0xb0] sm:$0xff] %v1387_v9 }
 0x681   : > { %1420 = vst [vmem:[%s2702_s11 + $0xb8] sm:$0xff] %v1388_v50  ;;  %1421 = vst [vmem:[%s2702_s11 + $0xc0] sm:$0xff] %v1389_v10 }
 0x682   : > { %1422 = vst [vmem:[%s2702_s11 + $0xc8] sm:$0xff] %v1390_v42  ;;  %1423 = vst [vmem:[%s2702_s11 + $0xd0] sm:$0xff] %v1391_v27 }
 0x683   : > { %1424 = vst [vmem:[%s2702_s11 + $0xd8] sm:$0xff] %v1392_v54  ;;  %1425 = vst [vmem:[%s2702_s11 + $0xe0] sm:$0xff] %v1393_v48 }
 0x684   : > { %1426 = vst [vmem:[%s2702_s11 + $0xe8] sm:$0xff] %v1394_v35  ;;  %1427 = vst [vmem:[%s2702_s11 + $0xf0] sm:$0xff] %v1395_v46 }
 0x685   : > { %1428 = vst [vmem:[%s2702_s11 + $0xf8] sm:$0xff] %v1396_v22 }
 0x686 PF: > { %s18_s20 = sadd.s32 1, %s1980_s20   ;;  %s2812_s18 = smov %s2132_s15 }
 0x687   : > { %p15_p9 = scmp.ge.s32.totalorder %s18_s20, 4   ;;  %s2813_s15 = smov %s1964_s16 }
 0x688   : > { %s2814_s16 = smov %s1968_s17  ;;  %s2815_s17 = smov %s2812_s18 }
 0x689   : > { %s2816_s18 = smov %s1976_s19  ;;  %s2817_s19 = smov %s2819_s10 }
 0x68a   :  { %17 = sbr.rel (!%p15_p9) target bundleno = 5 (0x5), region = 92 }
 0x691   :  { %1450 = vsyncpa [#allocation5], 1 }
 0x692   :  { %1452 = vsyncpa [#allocation5 + $0x1], 1 }
 0x693   :  { %1453 = vsyncpa [#allocation7], 1 }

</bundles_post_ra>
